<compile_context>
chip_gen: v7x
topology: tpu7x:2x2x1
jax: 0.10.0
libtpu: 0.0.40
codegen_flags: <defaults>
</compile_context>

<pallas_src>
import jax
import jax.numpy as jnp
from jax.experimental import pallas as pl
from jax.experimental.pallas import tpu as pltpu

LANE = 128


def _round_up(n, m):
    return ((n + m - 1) // m) * m


def _linear(x_bf16, w_ref, b_ref):
    # bf16 operands on the MXU, f32 accumulation, f32 bias broadcast-add.
    return jnp.dot(x_bf16, w_ref[...], preferred_element_type=jnp.float32) + b_ref[...]


def _relu_bf16(y_f32):
    # ReLU in f32 (VPU; v5e has no bf16 VALU), then cast to bf16 for the next MXU dot.
    # (max-then-cast == cast-then-max for ReLU, so this is also correct on v6e/v7x.)
    return jnp.maximum(y_f32, 0.0).astype(jnp.bfloat16)


def vae_forward_kernel(
    # activations (tiled along batch)
    x_ref, eps_ref,
    # encoder params (VMEM-resident, constant block index); ew4/eb4 is the fused
    # [hid_p, 2*lat_p] mu|logvar head
    ew1, eb1, ew2, eb2, ew3, eb3, ew4, eb4,
    # decoder params
    dw1, db1, dw2, db2, dw3, db3, dw4, db4,
    # outputs (tiled along batch)
    recon_ref, mu_ref, logvar_ref,
):
    lat_p = mu_ref.shape[-1]
    x = x_ref[...]                                     # bf16 [TB, in_p]

    # ---- encoder: Linear -> (Dropout=identity) -> ReLU, x3 ----
    h = _relu_bf16(_linear(x, ew1, eb1))
    h = _relu_bf16(_linear(h, ew2, eb2))
    h = _relu_bf16(_linear(h, ew3, eb3))

    # fused mu|logvar head: one N=2*lat_p MXU pass; split is vreg-aligned (lat_p % 128 == 0)
    lat = _linear(h, ew4, eb4)                         # f32 [TB, 2*lat_p]
    mu = lat[:, :lat_p]
    logvar = lat[:, lat_p:]

    # ---- reparameterize: z = eps * exp(0.5*logvar) + mu (f32 elementwise) ----
    std = jnp.exp(0.5 * logvar)
    z = eps_ref[...] * std + mu
    zb = z.astype(jnp.bfloat16)

    # ---- decoder: Linear -> (Dropout=identity) -> ReLU, x3, then final Linear ----
    d = _relu_bf16(_linear(zb, dw1, db1))
    d = _relu_bf16(_linear(d, dw2, db2))
    d = _relu_bf16(_linear(d, dw3, db3))
    recon = _linear(d, dw4, db4)                       # f32 [TB, in_p]

    recon_ref[...] = recon.astype(recon_ref.dtype)     # bf16 writeback (largest stream)
    mu_ref[...] = mu
    logvar_ref[...] = logvar


def init_params(key, input_dim, hidden_dim, latent_dim):
    """PyTorch-style logical params: weights (in_dim, out_dim) f32, bias (1, out_dim) f32."""
    dims = [
        # encoder
        (input_dim, input_dim),
        (input_dim, hidden_dim),
        (hidden_dim, hidden_dim),
        (hidden_dim, 2 * latent_dim),
        # decoder
        (latent_dim, hidden_dim),
        (hidden_dim, hidden_dim),
        (hidden_dim, input_dim),
        (input_dim, input_dim),
    ]
    params = []
    for i, (d_in, d_out) in enumerate(dims):
        kw, kb = jax.random.split(jax.random.fold_in(key, i))
        scale = 1.0 / jnp.sqrt(jnp.float32(d_in))
        w = jax.random.uniform(kw, (d_in, d_out), jnp.float32, -scale, scale)
        b = jax.random.uniform(kb, (1, d_out), jnp.float32, -scale, scale)
        params.append((w, b))
    return params


def prepare_params(params, input_dim, hidden_dim, latent_dim):
    """Zero-pad logical params to 128-lane multiples and cast weights to bf16.
    The final encoder Linear stays a single fused [hid_p, 2*lat_p] weight: the mu
    columns land in [:, :lat_p] and the logvar columns in [:, lat_p:]."""
    # TODO(synk): generation-aware padding (round hidden to 256 on v6e/v7x when close).
    in_p = _round_up(input_dim, LANE)
    hid_p = _round_up(hidden_dim, LANE)
    lat_p = _round_up(latent_dim, LANE)

    def pad_w(w, r, c):
        w = jnp.asarray(w, jnp.float32)
        out = jnp.zeros((r, c), jnp.float32).at[: w.shape[0], : w.shape[1]].set(w)
        return out.astype(jnp.bfloat16)

    def pad_b(b, c):
        b = jnp.asarray(b, jnp.float32).reshape(-1)
        return jnp.zeros((1, c), jnp.float32).at[0, : b.shape[0]].set(b)

    (ew1, eb1), (ew2, eb2), (ew3, eb3), (ew4, eb4) = params[:4]
    (dw1, db1), (dw2, db2), (dw3, db3), (dw4, db4) = params[4:]

    # fused mu|logvar head, padded so each half starts at a 128-lane boundary
    w4 = jnp.asarray(ew4, jnp.float32)
    b4 = jnp.asarray(eb4, jnp.float32).reshape(-1)
    w4p = jnp.zeros((hid_p, 2 * lat_p), jnp.float32)
    w4p = w4p.at[:hidden_dim, :latent_dim].set(w4[:, :latent_dim])
    w4p = w4p.at[:hidden_dim, lat_p:lat_p + latent_dim].set(w4[:, latent_dim:])
    w4p = w4p.astype(jnp.bfloat16)
    b4p = jnp.zeros((1, 2 * lat_p), jnp.float32)
    b4p = b4p.at[0, :latent_dim].set(b4[:latent_dim])
    b4p = b4p.at[0, lat_p:lat_p + latent_dim].set(b4[latent_dim:])

    prepared = [
        pad_w(ew1, in_p, in_p), pad_b(eb1, in_p),
        pad_w(ew2, in_p, hid_p), pad_b(eb2, hid_p),
        pad_w(ew3, hid_p, hid_p), pad_b(eb3, hid_p),
        w4p, b4p,
        pad_w(dw1, lat_p, hid_p), pad_b(db1, hid_p),
        pad_w(dw2, hid_p, hid_p), pad_b(db2, hid_p),
        pad_w(dw3, hid_p, in_p), pad_b(db3, in_p),
        pad_w(dw4, in_p, in_p), pad_b(db4, in_p),
    ]
    return prepared, (in_p, hid_p, lat_p)


def _build_vae_call(tile_b, n_tiles, b_pad, in_p, lat_p, prepared, single_buffer_params):
    def act_spec(d):
        return pl.BlockSpec((tile_b, d), lambda i: (i, 0))

    def const_spec(shape):
        if single_buffer_params:
            # resident params: fetched once, constant block index -> no second buffer
            return pl.BlockSpec(shape, lambda i: (0, 0), pipeline_mode=pl.Buffered(1))
        return pl.BlockSpec(shape, lambda i: (0, 0))

    in_specs = [act_spec(in_p), act_spec(lat_p)] + [const_spec(p.shape) for p in prepared]
    out_specs = (act_spec(in_p), act_spec(lat_p), act_spec(lat_p))

    # VMEM budget: resident params (1x or 2x) + double-buffered activation/output
    # tiles + headroom for intermediates; clamp to [32 MiB, 64 MiB] (v7x physical).
    param_bytes = sum(int(p.size) * p.dtype.itemsize for p in prepared)
    io_tile_bytes = tile_b * (in_p * 2 + lat_p * 4       # x (bf16), eps (f32) in
                              + in_p * 2 + 2 * lat_p * 4)  # recon (bf16), mu/lv (f32) out
    needed = (1 if single_buffer_params else 2) * param_bytes + 2 * io_tile_bytes
    vmem_limit = min(max(int(needed * 1.5) + (4 << 20), 32 << 20), 64 << 20)

    hid_p = prepared[2].shape[1]
    layer_dims = [(in_p, in_p), (in_p, hid_p), (hid_p, hid_p), (hid_p, 2 * lat_p),
                  (lat_p, hid_p), (hid_p, hid_p), (hid_p, in_p), (in_p, in_p)]
    flops = 2 * b_pad * sum(a * b for a, b in layer_dims)
    bytes_accessed = (b_pad * in_p * 2 + b_pad * lat_p * 4 + param_bytes
                      + b_pad * in_p * 2 + 2 * b_pad * lat_p * 4)
    cost = pl.CostEstimate(flops=int(flops), transcendentals=int(b_pad * lat_p),
                           bytes_accessed=int(bytes_accessed))

    return pl.pallas_call(
        vae_forward_kernel,
        grid=(n_tiles,),
        out_shape=(
            jax.ShapeDtypeStruct((b_pad, in_p), jnp.bfloat16),   # recon (padded, bf16)
            jax.ShapeDtypeStruct((b_pad, lat_p), jnp.float32),   # mu (padded)
            jax.ShapeDtypeStruct((b_pad, lat_p), jnp.float32),   # log_var (padded)
        ),
        in_specs=in_specs,
        out_specs=out_specs,
        compiler_params=pltpu.CompilerParams(
            dimension_semantics=("parallel",),     # batch tiles shard across TCs (v7x)
            vmem_limit_bytes=vmem_limit),
        cost_estimate=cost,
    )


def vae_forward(x, eps, params, *, latent_dim: int, max_tile_b: int = 512):
    """Full VAE forward in one batch-tiled Pallas call. Returns (recon, mu, log_var)."""
    B, input_dim = x.shape
    hidden_dim = params[1][0].shape[1]
    prepared, (in_p, hid_p, lat_p) = prepare_params(params, input_dim, hidden_dim, latent_dim)

    # Batch tile: multiple of 16 sublanes (bf16-friendly), large enough to amortize
    # MXU fill/drain, but split into >=2 tiles when possible so the "parallel"
    # batch axis keeps both v7x TensorCores busy.
    tile_b = min(max_tile_b, _round_up(B, 16))
    if B > 16 and pl.cdiv(B, tile_b) == 1:
        tile_b = _round_up(pl.cdiv(B, 2), 16)
    n_tiles = pl.cdiv(B, tile_b)
    b_pad = n_tiles * tile_b

    # fused pads (no zeros+scatter round trip through HBM)
    x_p = jnp.pad(x.astype(jnp.bfloat16), ((0, b_pad - B), (0, in_p - input_dim)))
    eps_p = jnp.pad(eps.astype(jnp.float32), ((0, b_pad - B), (0, lat_p - latent_dim)))

    try:
        call = _build_vae_call(tile_b, n_tiles, b_pad, in_p, lat_p, prepared,
                               single_buffer_params=True)
        recon_p, mu_p, lv_p = call(x_p, eps_p, *prepared)
    except Exception:
        # fallback if this jax build rejects pl.Buffered(1) on resident params
        call = _build_vae_call(tile_b, n_tiles, b_pad, in_p, lat_p, prepared,
                               single_buffer_params=False)
        recon_p, mu_p, lv_p = call(x_p, eps_p, *prepared)

    return (recon_p[:B, :input_dim].astype(x.dtype),
            mu_p[:B, :latent_dim],
            lv_p[:B, :latent_dim])


def vae_forward_ref(x, eps, params, *, latent_dim: int):
    """Pure-JAX reference matching the kernel's bf16-operand / f32-accumulate math."""
    def lin(a, w, b):
        y = jnp.dot(a.astype(jnp.bfloat16), jnp.asarray(w, jnp.float32).astype(jnp.bfloat16),
                    preferred_element_type=jnp.float32)
        return y + jnp.asarray(b, jnp.float32).reshape(1, -1)

    (ew1, eb1), (ew2, eb2), (ew3, eb3), (ew4, eb4) = params[:4]
    (dw1, db1), (dw2, db2), (dw3, db3), (dw4, db4) = params[4:]
    h = jax.nn.relu(lin(x, ew1, eb1))
    h = jax.nn.relu(lin(h, ew2, eb2))
    h = jax.nn.relu(lin(h, ew3, eb3))
    lat = lin(h, ew4, eb4)
    mu, logvar = lat[:, :latent_dim], lat[:, latent_dim:]
    z = eps * jnp.exp(0.5 * logvar) + mu
    d = jax.nn.relu(lin(z, dw1, db1))
    d = jax.nn.relu(lin(d, dw2, db2))
    d = jax.nn.relu(lin(d, dw3, db3))
    recon = lin(d, dw4, db4)
    return recon, mu, logvar


if __name__ == "__main__":
    key = jax.random.PRNGKey(0)
    k_x, k_eps, k_p = jax.random.split(key, 3)

    INPUT_DIM, HIDDEN_DIM, LATENT_DIM = 16, 32, 8
    params = init_params(k_p, INPUT_DIM, HIDDEN_DIM, LATENT_DIM)

    # B=8 exercises the single-tile path; B=40 exercises the multi-tile path with
    # a padded (ragged) last batch tile.
    for B in (8, 40):
        kx = jax.random.fold_in(k_x, B)
        ke = jax.random.fold_in(k_eps, B)
        x = jax.random.normal(kx, (B, INPUT_DIM), jnp.float32)
        eps = jax.random.normal(ke, (B, LATENT_DIM), jnp.float32)   # randn_like(std)

        recon, mu, logvar = vae_forward(x, eps, params, latent_dim=LATENT_DIM)
        jax.block_until_ready((recon, mu, logvar))

        r_ref, m_ref, lv_ref = vae_forward_ref(x, eps, params, latent_dim=LATENT_DIM)
        assert recon.shape == (B, INPUT_DIM)
        assert mu.shape == (B, LATENT_DIM) and logvar.shape == (B, LATENT_DIM)
        assert jnp.allclose(mu, m_ref, atol=1e-2, rtol=1e-2)
        assert jnp.allclose(logvar, lv_ref, atol=1e-2, rtol=1e-2)
        assert jnp.allclose(recon, r_ref, atol=2e-2, rtol=2e-2)   # recon stored as bf16

    print("KERNEL_OK")
</pallas_src>

<mosaic_0001>
module attributes {stable_mosaic.version = 11 : i64} {
  func.func @vae_forward_kernel(%arg0: i32, %arg1: memref<16x128xbf16, #tpu.memory_space<vmem>>, %arg2: memref<16x128xf32, #tpu.memory_space<vmem>>, %arg3: memref<128x128xbf16, #tpu.memory_space<vmem>>, %arg4: memref<1x128xf32, #tpu.memory_space<vmem>>, %arg5: memref<128x128xbf16, #tpu.memory_space<vmem>>, %arg6: memref<1x128xf32, #tpu.memory_space<vmem>>, %arg7: memref<128x128xbf16, #tpu.memory_space<vmem>>, %arg8: memref<1x128xf32, #tpu.memory_space<vmem>>, %arg9: memref<128x256xbf16, #tpu.memory_space<vmem>>, %arg10: memref<1x256xf32, #tpu.memory_space<vmem>>, %arg11: memref<128x128xbf16, #tpu.memory_space<vmem>>, %arg12: memref<1x128xf32, #tpu.memory_space<vmem>>, %arg13: memref<128x128xbf16, #tpu.memory_space<vmem>>, %arg14: memref<1x128xf32, #tpu.memory_space<vmem>>, %arg15: memref<128x128xbf16, #tpu.memory_space<vmem>>, %arg16: memref<1x128xf32, #tpu.memory_space<vmem>>, %arg17: memref<128x128xbf16, #tpu.memory_space<vmem>>, %arg18: memref<1x128xf32, #tpu.memory_space<vmem>>, %arg19: memref<16x128xbf16, #tpu.memory_space<vmem>>, %arg20: memref<16x128xf32, #tpu.memory_space<vmem>>, %arg21: memref<16x128xf32, #tpu.memory_space<vmem>>) attributes {dimension_semantics = [#tpu.dimension_semantics<parallel>], iteration_bounds = array<i64: 1>, scalar_prefetch = 0 : i64, scratch_operands = 0 : i64, tpu.core_type = #tpu.core_type<tc>, window_params = [{transform_indices = @transform_0, window_bounds = array<i64: 16, 128>}, {transform_indices = @transform_1, window_bounds = array<i64: 16, 128>}, {pipeline_mode = #tpu.pipeline_mode<synchronous>, transform_indices = @transform_2, window_bounds = array<i64: 128, 128>}, {pipeline_mode = #tpu.pipeline_mode<synchronous>, transform_indices = @transform_3, window_bounds = array<i64: 1, 128>}, {pipeline_mode = #tpu.pipeline_mode<synchronous>, transform_indices = @transform_4, window_bounds = array<i64: 128, 128>}, {pipeline_mode = #tpu.pipeline_mode<synchronous>, transform_indices = @transform_5, window_bounds = array<i64: 1, 128>}, {pipeline_mode = #tpu.pipeline_mode<synchronous>, transform_indices = @transform_6, window_bounds = array<i64: 128, 128>}, {pipeline_mode = #tpu.pipeline_mode<synchronous>, transform_indices = @transform_7, window_bounds = array<i64: 1, 128>}, {pipeline_mode = #tpu.pipeline_mode<synchronous>, transform_indices = @transform_8, window_bounds = array<i64: 128, 256>}, {pipeline_mode = #tpu.pipeline_mode<synchronous>, transform_indices = @transform_9, window_bounds = array<i64: 1, 256>}, {pipeline_mode = #tpu.pipeline_mode<synchronous>, transform_indices = @transform_10, window_bounds = array<i64: 128, 128>}, {pipeline_mode = #tpu.pipeline_mode<synchronous>, transform_indices = @transform_11, window_bounds = array<i64: 1, 128>}, {pipeline_mode = #tpu.pipeline_mode<synchronous>, transform_indices = @transform_12, window_bounds = array<i64: 128, 128>}, {pipeline_mode = #tpu.pipeline_mode<synchronous>, transform_indices = @transform_13, window_bounds = array<i64: 1, 128>}, {pipeline_mode = #tpu.pipeline_mode<synchronous>, transform_indices = @transform_14, window_bounds = array<i64: 128, 128>}, {pipeline_mode = #tpu.pipeline_mode<synchronous>, transform_indices = @transform_15, window_bounds = array<i64: 1, 128>}, {pipeline_mode = #tpu.pipeline_mode<synchronous>, transform_indices = @transform_16, window_bounds = array<i64: 128, 128>}, {pipeline_mode = #tpu.pipeline_mode<synchronous>, transform_indices = @transform_17, window_bounds = array<i64: 1, 128>}, {transform_indices = @transform_18, window_bounds = array<i64: 16, 128>}, {transform_indices = @transform_19, window_bounds = array<i64: 16, 128>}, {transform_indices = @transform_20, window_bounds = array<i64: 16, 128>}]} {
    %c0 = arith.constant 0 : index
    %c0_0 = arith.constant 0 : index
    %0 = vector.load %arg1[%c0, %c0_0] : memref<16x128xbf16, #tpu.memory_space<vmem>>, vector<16x128xbf16>
    %c0_1 = arith.constant 0 : index
    %c0_2 = arith.constant 0 : index
    %1 = vector.load %arg3[%c0_1, %c0_2] : memref<128x128xbf16, #tpu.memory_space<vmem>>, vector<128x128xbf16>
    %cst = arith.constant dense<0.000000e+00> : vector<16x128xf32>
    %2 = tpu.matmul %0, %1, %cst {dimension_numbers = #tpu.dot_dimension_numbers<[1], [0], [0], [1], [0, 0, 1, 1], [], []>} : vector<16x128xbf16>, vector<128x128xbf16>, vector<16x128xf32> -> vector<16x128xf32>
    %c0_3 = arith.constant 0 : index
    %c0_4 = arith.constant 0 : index
    %3 = vector.load %arg4[%c0_3, %c0_4] : memref<1x128xf32, #tpu.memory_space<vmem>>, vector<1x128xf32>
    %4 = vector.broadcast %3 : vector<1x128xf32> to vector<16x128xf32>
    %5 = arith.addf %2, %4 : vector<16x128xf32>
    %cst_5 = arith.constant 0.000000e+00 : f32
    %6 = vector.broadcast %cst_5 : f32 to vector<16x128xf32>
    %7 = arith.maximumf %5, %6 : vector<16x128xf32>
    %8 = arith.truncf %7 : vector<16x128xf32> to vector<16x128xbf16>
    %c0_6 = arith.constant 0 : index
    %c0_7 = arith.constant 0 : index
    %9 = vector.load %arg5[%c0_6, %c0_7] : memref<128x128xbf16, #tpu.memory_space<vmem>>, vector<128x128xbf16>
    %cst_8 = arith.constant dense<0.000000e+00> : vector<16x128xf32>
    %10 = tpu.matmul %8, %9, %cst_8 {dimension_numbers = #tpu.dot_dimension_numbers<[1], [0], [0], [1], [0, 0, 1, 1], [], []>} : vector<16x128xbf16>, vector<128x128xbf16>, vector<16x128xf32> -> vector<16x128xf32>
    %c0_9 = arith.constant 0 : index
    %c0_10 = arith.constant 0 : index
    %11 = vector.load %arg6[%c0_9, %c0_10] : memref<1x128xf32, #tpu.memory_space<vmem>>, vector<1x128xf32>
    %12 = vector.broadcast %11 : vector<1x128xf32> to vector<16x128xf32>
    %13 = arith.addf %10, %12 : vector<16x128xf32>
    %cst_11 = arith.constant 0.000000e+00 : f32
    %14 = vector.broadcast %cst_11 : f32 to vector<16x128xf32>
    %15 = arith.maximumf %13, %14 : vector<16x128xf32>
    %16 = arith.truncf %15 : vector<16x128xf32> to vector<16x128xbf16>
    %c0_12 = arith.constant 0 : index
    %c0_13 = arith.constant 0 : index
    %17 = vector.load %arg7[%c0_12, %c0_13] : memref<128x128xbf16, #tpu.memory_space<vmem>>, vector<128x128xbf16>
    %cst_14 = arith.constant dense<0.000000e+00> : vector<16x128xf32>
    %18 = tpu.matmul %16, %17, %cst_14 {dimension_numbers = #tpu.dot_dimension_numbers<[1], [0], [0], [1], [0, 0, 1, 1], [], []>} : vector<16x128xbf16>, vector<128x128xbf16>, vector<16x128xf32> -> vector<16x128xf32>
    %c0_15 = arith.constant 0 : index
    %c0_16 = arith.constant 0 : index
    %19 = vector.load %arg8[%c0_15, %c0_16] : memref<1x128xf32, #tpu.memory_space<vmem>>, vector<1x128xf32>
    %20 = vector.broadcast %19 : vector<1x128xf32> to vector<16x128xf32>
    %21 = arith.addf %18, %20 : vector<16x128xf32>
    %cst_17 = arith.constant 0.000000e+00 : f32
    %22 = vector.broadcast %cst_17 : f32 to vector<16x128xf32>
    %23 = arith.maximumf %21, %22 : vector<16x128xf32>
    %24 = arith.truncf %23 : vector<16x128xf32> to vector<16x128xbf16>
    %c0_18 = arith.constant 0 : index
    %c0_19 = arith.constant 0 : index
    %25 = vector.load %arg9[%c0_18, %c0_19] : memref<128x256xbf16, #tpu.memory_space<vmem>>, vector<128x256xbf16>
    %cst_20 = arith.constant dense<0.000000e+00> : vector<16x256xf32>
    %26 = tpu.matmul %24, %25, %cst_20 {dimension_numbers = #tpu.dot_dimension_numbers<[1], [0], [0], [1], [0, 0, 1, 1], [], []>} : vector<16x128xbf16>, vector<128x256xbf16>, vector<16x256xf32> -> vector<16x256xf32>
    %c0_21 = arith.constant 0 : index
    %c0_22 = arith.constant 0 : index
    %27 = vector.load %arg10[%c0_21, %c0_22] : memref<1x256xf32, #tpu.memory_space<vmem>>, vector<1x256xf32>
    %28 = vector.broadcast %27 : vector<1x256xf32> to vector<16x256xf32>
    %29 = arith.addf %26, %28 : vector<16x256xf32>
    %30 = vector.extract_strided_slice %29 {offsets = [0, 0], sizes = [16, 128], strides = [1, 1]} : vector<16x256xf32> to vector<16x128xf32>
    %31 = vector.extract_strided_slice %29 {offsets = [0, 128], sizes = [16, 128], strides = [1, 1]} : vector<16x256xf32> to vector<16x128xf32>
    %cst_23 = arith.constant 5.000000e-01 : f32
    %32 = vector.broadcast %cst_23 : f32 to vector<16x128xf32>
    %33 = arith.mulf %32, %31 : vector<16x128xf32>
    %34 = math.exp %33 : vector<16x128xf32>
    %c0_24 = arith.constant 0 : index
    %c0_25 = arith.constant 0 : index
    %35 = vector.load %arg2[%c0_24, %c0_25] : memref<16x128xf32, #tpu.memory_space<vmem>>, vector<16x128xf32>
    %36 = arith.mulf %35, %34 : vector<16x128xf32>
    %37 = arith.addf %36, %30 : vector<16x128xf32>
    %38 = arith.truncf %37 : vector<16x128xf32> to vector<16x128xbf16>
    %c0_26 = arith.constant 0 : index
    %c0_27 = arith.constant 0 : index
    %39 = vector.load %arg11[%c0_26, %c0_27] : memref<128x128xbf16, #tpu.memory_space<vmem>>, vector<128x128xbf16>
    %cst_28 = arith.constant dense<0.000000e+00> : vector<16x128xf32>
    %40 = tpu.matmul %38, %39, %cst_28 {dimension_numbers = #tpu.dot_dimension_numbers<[1], [0], [0], [1], [0, 0, 1, 1], [], []>} : vector<16x128xbf16>, vector<128x128xbf16>, vector<16x128xf32> -> vector<16x128xf32>
    %c0_29 = arith.constant 0 : index
    %c0_30 = arith.constant 0 : index
    %41 = vector.load %arg12[%c0_29, %c0_30] : memref<1x128xf32, #tpu.memory_space<vmem>>, vector<1x128xf32>
    %42 = vector.broadcast %41 : vector<1x128xf32> to vector<16x128xf32>
    %43 = arith.addf %40, %42 : vector<16x128xf32>
    %cst_31 = arith.constant 0.000000e+00 : f32
    %44 = vector.broadcast %cst_31 : f32 to vector<16x128xf32>
    %45 = arith.maximumf %43, %44 : vector<16x128xf32>
    %46 = arith.truncf %45 : vector<16x128xf32> to vector<16x128xbf16>
    %c0_32 = arith.constant 0 : index
    %c0_33 = arith.constant 0 : index
    %47 = vector.load %arg13[%c0_32, %c0_33] : memref<128x128xbf16, #tpu.memory_space<vmem>>, vector<128x128xbf16>
    %cst_34 = arith.constant dense<0.000000e+00> : vector<16x128xf32>
    %48 = tpu.matmul %46, %47, %cst_34 {dimension_numbers = #tpu.dot_dimension_numbers<[1], [0], [0], [1], [0, 0, 1, 1], [], []>} : vector<16x128xbf16>, vector<128x128xbf16>, vector<16x128xf32> -> vector<16x128xf32>
    %c0_35 = arith.constant 0 : index
    %c0_36 = arith.constant 0 : index
    %49 = vector.load %arg14[%c0_35, %c0_36] : memref<1x128xf32, #tpu.memory_space<vmem>>, vector<1x128xf32>
    %50 = vector.broadcast %49 : vector<1x128xf32> to vector<16x128xf32>
    %51 = arith.addf %48, %50 : vector<16x128xf32>
    %cst_37 = arith.constant 0.000000e+00 : f32
    %52 = vector.broadcast %cst_37 : f32 to vector<16x128xf32>
    %53 = arith.maximumf %51, %52 : vector<16x128xf32>
    %54 = arith.truncf %53 : vector<16x128xf32> to vector<16x128xbf16>
    %c0_38 = arith.constant 0 : index
    %c0_39 = arith.constant 0 : index
    %55 = vector.load %arg15[%c0_38, %c0_39] : memref<128x128xbf16, #tpu.memory_space<vmem>>, vector<128x128xbf16>
    %cst_40 = arith.constant dense<0.000000e+00> : vector<16x128xf32>
    %56 = tpu.matmul %54, %55, %cst_40 {dimension_numbers = #tpu.dot_dimension_numbers<[1], [0], [0], [1], [0, 0, 1, 1], [], []>} : vector<16x128xbf16>, vector<128x128xbf16>, vector<16x128xf32> -> vector<16x128xf32>
    %c0_41 = arith.constant 0 : index
    %c0_42 = arith.constant 0 : index
    %57 = vector.load %arg16[%c0_41, %c0_42] : memref<1x128xf32, #tpu.memory_space<vmem>>, vector<1x128xf32>
    %58 = vector.broadcast %57 : vector<1x128xf32> to vector<16x128xf32>
    %59 = arith.addf %56, %58 : vector<16x128xf32>
    %cst_43 = arith.constant 0.000000e+00 : f32
    %60 = vector.broadcast %cst_43 : f32 to vector<16x128xf32>
    %61 = arith.maximumf %59, %60 : vector<16x128xf32>
    %62 = arith.truncf %61 : vector<16x128xf32> to vector<16x128xbf16>
    %c0_44 = arith.constant 0 : index
    %c0_45 = arith.constant 0 : index
    %63 = vector.load %arg17[%c0_44, %c0_45] : memref<128x128xbf16, #tpu.memory_space<vmem>>, vector<128x128xbf16>
    %cst_46 = arith.constant dense<0.000000e+00> : vector<16x128xf32>
    %64 = tpu.matmul %62, %63, %cst_46 {dimension_numbers = #tpu.dot_dimension_numbers<[1], [0], [0], [1], [0, 0, 1, 1], [], []>} : vector<16x128xbf16>, vector<128x128xbf16>, vector<16x128xf32> -> vector<16x128xf32>
    %c0_47 = arith.constant 0 : index
    %c0_48 = arith.constant 0 : index
    %65 = vector.load %arg18[%c0_47, %c0_48] : memref<1x128xf32, #tpu.memory_space<vmem>>, vector<1x128xf32>
    %66 = vector.broadcast %65 : vector<1x128xf32> to vector<16x128xf32>
    %67 = arith.addf %64, %66 : vector<16x128xf32>
    %68 = arith.truncf %67 : vector<16x128xf32> to vector<16x128xbf16>
    %c0_49 = arith.constant 0 : index
    %c0_50 = arith.constant 0 : index
    %69 = vector.load %arg19[%c0_49, %c0_50] : memref<16x128xbf16, #tpu.memory_space<vmem>>, vector<16x128xbf16>
    tpu.vector_store %arg19[%c0_49, %c0_50], %68 {strides = array<i32>} : memref<16x128xbf16, #tpu.memory_space<vmem>>, vector<16x128xbf16>,
    %c0_51 = arith.constant 0 : index
    %c0_52 = arith.constant 0 : index
    %70 = vector.load %arg20[%c0_51, %c0_52] : memref<16x128xf32, #tpu.memory_space<vmem>>, vector<16x128xf32>
    tpu.vector_store %arg20[%c0_51, %c0_52], %30 {strides = array<i32>} : memref<16x128xf32, #tpu.memory_space<vmem>>, vector<16x128xf32>,
    %c0_53 = arith.constant 0 : index
    %c0_54 = arith.constant 0 : index
    %71 = vector.load %arg21[%c0_53, %c0_54] : memref<16x128xf32, #tpu.memory_space<vmem>>, vector<16x128xf32>
    tpu.vector_store %arg21[%c0_53, %c0_54], %31 {strides = array<i32>} : memref<16x128xf32, #tpu.memory_space<vmem>>, vector<16x128xf32>,
    return
  }
  func.func @transform_0(%arg0: i32) -> (i32, i32) {
    %c0_i32 = arith.constant 0 : i32
    %c0_i32_0 = arith.constant 0 : i32
    return %arg0, %c0_i32 : i32, i32
  }
  func.func @transform_1(%arg0: i32) -> (i32, i32) {
    %c0_i32 = arith.constant 0 : i32
    %c0_i32_0 = arith.constant 0 : i32
    return %arg0, %c0_i32 : i32, i32
  }
  func.func @transform_2(%arg0: i32) -> (i32, i32) {
    %c0_i32 = arith.constant 0 : i32
    %c0_i32_0 = arith.constant 0 : i32
    %c0_i32_1 = arith.constant 0 : i32
    return %c0_i32, %c0_i32_0 : i32, i32
  }
  func.func @transform_3(%arg0: i32) -> (i32, i32) {
    %c0_i32 = arith.constant 0 : i32
    %c0_i32_0 = arith.constant 0 : i32
    %c0_i32_1 = arith.constant 0 : i32
    return %c0_i32, %c0_i32_0 : i32, i32
  }
  func.func @transform_4(%arg0: i32) -> (i32, i32) {
    %c0_i32 = arith.constant 0 : i32
    %c0_i32_0 = arith.constant 0 : i32
    %c0_i32_1 = arith.constant 0 : i32
    return %c0_i32, %c0_i32_0 : i32, i32
  }
  func.func @transform_5(%arg0: i32) -> (i32, i32) {
    %c0_i32 = arith.constant 0 : i32
    %c0_i32_0 = arith.constant 0 : i32
    %c0_i32_1 = arith.constant 0 : i32
    return %c0_i32, %c0_i32_0 : i32, i32
  }
  func.func @transform_6(%arg0: i32) -> (i32, i32) {
    %c0_i32 = arith.constant 0 : i32
    %c0_i32_0 = arith.constant 0 : i32
    %c0_i32_1 = arith.constant 0 : i32
    return %c0_i32, %c0_i32_0 : i32, i32
  }
  func.func @transform_7(%arg0: i32) -> (i32, i32) {
    %c0_i32 = arith.constant 0 : i32
    %c0_i32_0 = arith.constant 0 : i32
    %c0_i32_1 = arith.constant 0 : i32
    return %c0_i32, %c0_i32_0 : i32, i32
  }
  func.func @transform_8(%arg0: i32) -> (i32, i32) {
    %c0_i32 = arith.constant 0 : i32
    %c0_i32_0 = arith.constant 0 : i32
    %c0_i32_1 = arith.constant 0 : i32
    return %c0_i32, %c0_i32_0 : i32, i32
  }
  func.func @transform_9(%arg0: i32) -> (i32, i32) {
    %c0_i32 = arith.constant 0 : i32
    %c0_i32_0 = arith.constant 0 : i32
    %c0_i32_1 = arith.constant 0 : i32
    return %c0_i32, %c0_i32_0 : i32, i32
  }
  func.func @transform_10(%arg0: i32) -> (i32, i32) {
    %c0_i32 = arith.constant 0 : i32
    %c0_i32_0 = arith.constant 0 : i32
    %c0_i32_1 = arith.constant 0 : i32
    return %c0_i32, %c0_i32_0 : i32, i32
  }
  func.func @transform_11(%arg0: i32) -> (i32, i32) {
    %c0_i32 = arith.constant 0 : i32
    %c0_i32_0 = arith.constant 0 : i32
    %c0_i32_1 = arith.constant 0 : i32
    return %c0_i32, %c0_i32_0 : i32, i32
  }
  func.func @transform_12(%arg0: i32) -> (i32, i32) {
    %c0_i32 = arith.constant 0 : i32
    %c0_i32_0 = arith.constant 0 : i32
    %c0_i32_1 = arith.constant 0 : i32
    return %c0_i32, %c0_i32_0 : i32, i32
  }
  func.func @transform_13(%arg0: i32) -> (i32, i32) {
    %c0_i32 = arith.constant 0 : i32
    %c0_i32_0 = arith.constant 0 : i32
    %c0_i32_1 = arith.constant 0 : i32
    return %c0_i32, %c0_i32_0 : i32, i32
  }
  func.func @transform_14(%arg0: i32) -> (i32, i32) {
    %c0_i32 = arith.constant 0 : i32
    %c0_i32_0 = arith.constant 0 : i32
    %c0_i32_1 = arith.constant 0 : i32
    return %c0_i32, %c0_i32_0 : i32, i32
  }
  func.func @transform_15(%arg0: i32) -> (i32, i32) {
    %c0_i32 = arith.constant 0 : i32
    %c0_i32_0 = arith.constant 0 : i32
    %c0_i32_1 = arith.constant 0 : i32
    return %c0_i32, %c0_i32_0 : i32, i32
  }
  func.func @transform_16(%arg0: i32) -> (i32, i32) {
    %c0_i32 = arith.constant 0 : i32
    %c0_i32_0 = arith.constant 0 : i32
    %c0_i32_1 = arith.constant 0 : i32
    return %c0_i32, %c0_i32_0 : i32, i32
  }
  func.func @transform_17(%arg0: i32) -> (i32, i32) {
    %c0_i32 = arith.constant 0 : i32
    %c0_i32_0 = arith.constant 0 : i32
    %c0_i32_1 = arith.constant 0 : i32
    return %c0_i32, %c0_i32_0 : i32, i32
  }
  func.func @transform_18(%arg0: i32) -> (i32, i32) {
    %c0_i32 = arith.constant 0 : i32
    %c0_i32_0 = arith.constant 0 : i32
    return %arg0, %c0_i32 : i32, i32
  }
  func.func @transform_19(%arg0: i32) -> (i32, i32) {
    %c0_i32 = arith.constant 0 : i32
    %c0_i32_0 = arith.constant 0 : i32
    return %arg0, %c0_i32 : i32, i32
  }
  func.func @transform_20(%arg0: i32) -> (i32, i32) {
    %c0_i32 = arith.constant 0 : i32
    %c0_i32_0 = arith.constant 0 : i32
    return %arg0, %c0_i32 : i32, i32
  }
}

module attributes {stable_mosaic.version = 11 : i64} {
  func.func @vae_forward_kernel(%arg0: i32, %arg1: memref<16x128xbf16, #tpu.memory_space<vmem>>, %arg2: memref<16x128xf32, #tpu.memory_space<vmem>>, %arg3: memref<128x128xbf16, #tpu.memory_space<vmem>>, %arg4: memref<1x128xf32, #tpu.memory_space<vmem>>, %arg5: memref<128x128xbf16, #tpu.memory_space<vmem>>, %arg6: memref<1x128xf32, #tpu.memory_space<vmem>>, %arg7: memref<128x128xbf16, #tpu.memory_space<vmem>>, %arg8: memref<1x128xf32, #tpu.memory_space<vmem>>, %arg9: memref<128x256xbf16, #tpu.memory_space<vmem>>, %arg10: memref<1x256xf32, #tpu.memory_space<vmem>>, %arg11: memref<128x128xbf16, #tpu.memory_space<vmem>>, %arg12: memref<1x128xf32, #tpu.memory_space<vmem>>, %arg13: memref<128x128xbf16, #tpu.memory_space<vmem>>, %arg14: memref<1x128xf32, #tpu.memory_space<vmem>>, %arg15: memref<128x128xbf16, #tpu.memory_space<vmem>>, %arg16: memref<1x128xf32, #tpu.memory_space<vmem>>, %arg17: memref<128x128xbf16, #tpu.memory_space<vmem>>, %arg18: memref<1x128xf32, #tpu.memory_space<vmem>>, %arg19: memref<16x128xbf16, #tpu.memory_space<vmem>>, %arg20: memref<16x128xf32, #tpu.memory_space<vmem>>, %arg21: memref<16x128xf32, #tpu.memory_space<vmem>>) attributes {dimension_semantics = [#tpu.dimension_semantics<parallel>], iteration_bounds = array<i64: 1>, scalar_prefetch = 0 : i64, scratch_operands = 0 : i64, tpu.core_type = #tpu.core_type<tc>, window_params = [{transform_indices = @transform_0, window_bounds = array<i64: 16, 128>}, {transform_indices = @transform_1, window_bounds = array<i64: 16, 128>}, {pipeline_mode = #tpu.pipeline_mode<synchronous>, transform_indices = @transform_2, window_bounds = array<i64: 128, 128>}, {pipeline_mode = #tpu.pipeline_mode<synchronous>, transform_indices = @transform_3, window_bounds = array<i64: 1, 128>}, {pipeline_mode = #tpu.pipeline_mode<synchronous>, transform_indices = @transform_4, window_bounds = array<i64: 128, 128>}, {pipeline_mode = #tpu.pipeline_mode<synchronous>, transform_indices = @transform_5, window_bounds = array<i64: 1, 128>}, {pipeline_mode = #tpu.pipeline_mode<synchronous>, transform_indices = @transform_6, window_bounds = array<i64: 128, 128>}, {pipeline_mode = #tpu.pipeline_mode<synchronous>, transform_indices = @transform_7, window_bounds = array<i64: 1, 128>}, {pipeline_mode = #tpu.pipeline_mode<synchronous>, transform_indices = @transform_8, window_bounds = array<i64: 128, 256>}, {pipeline_mode = #tpu.pipeline_mode<synchronous>, transform_indices = @transform_9, window_bounds = array<i64: 1, 256>}, {pipeline_mode = #tpu.pipeline_mode<synchronous>, transform_indices = @transform_10, window_bounds = array<i64: 128, 128>}, {pipeline_mode = #tpu.pipeline_mode<synchronous>, transform_indices = @transform_11, window_bounds = array<i64: 1, 128>}, {pipeline_mode = #tpu.pipeline_mode<synchronous>, transform_indices = @transform_12, window_bounds = array<i64: 128, 128>}, {pipeline_mode = #tpu.pipeline_mode<synchronous>, transform_indices = @transform_13, window_bounds = array<i64: 1, 128>}, {pipeline_mode = #tpu.pipeline_mode<synchronous>, transform_indices = @transform_14, window_bounds = array<i64: 128, 128>}, {pipeline_mode = #tpu.pipeline_mode<synchronous>, transform_indices = @transform_15, window_bounds = array<i64: 1, 128>}, {pipeline_mode = #tpu.pipeline_mode<synchronous>, transform_indices = @transform_16, window_bounds = array<i64: 128, 128>}, {pipeline_mode = #tpu.pipeline_mode<synchronous>, transform_indices = @transform_17, window_bounds = array<i64: 1, 128>}, {transform_indices = @transform_18, window_bounds = array<i64: 16, 128>}, {transform_indices = @transform_19, window_bounds = array<i64: 16, 128>}, {transform_indices = @transform_20, window_bounds = array<i64: 16, 128>}]} {
    %c0 = arith.constant 0 : index
    %c0_0 = arith.constant 0 : index
    %0 = vector.load %arg1[%c0, %c0_0] : memref<16x128xbf16, #tpu.memory_space<vmem>>, vector<16x128xbf16>
    %c0_1 = arith.constant 0 : index
    %c0_2 = arith.constant 0 : index
    %1 = vector.load %arg3[%c0_1, %c0_2] : memref<128x128xbf16, #tpu.memory_space<vmem>>, vector<128x128xbf16>
    %cst = arith.constant dense<0.000000e+00> : vector<16x128xf32>
    %2 = tpu.matmul %0, %1, %cst {dimension_numbers = #tpu.dot_dimension_numbers<[1], [0], [0], [1], [0, 0, 1, 1], [], []>} : vector<16x128xbf16>, vector<128x128xbf16>, vector<16x128xf32> -> vector<16x128xf32>
    %c0_3 = arith.constant 0 : index
    %c0_4 = arith.constant 0 : index
    %3 = vector.load %arg4[%c0_3, %c0_4] : memref<1x128xf32, #tpu.memory_space<vmem>>, vector<1x128xf32>
    %4 = vector.broadcast %3 : vector<1x128xf32> to vector<16x128xf32>
    %5 = arith.addf %2, %4 : vector<16x128xf32>
    %cst_5 = arith.constant 0.000000e+00 : f32
    %6 = vector.broadcast %cst_5 : f32 to vector<16x128xf32>
    %7 = arith.maximumf %5, %6 : vector<16x128xf32>
    %8 = arith.truncf %7 : vector<16x128xf32> to vector<16x128xbf16>
    %c0_6 = arith.constant 0 : index
    %c0_7 = arith.constant 0 : index
    %9 = vector.load %arg5[%c0_6, %c0_7] : memref<128x128xbf16, #tpu.memory_space<vmem>>, vector<128x128xbf16>
    %cst_8 = arith.constant dense<0.000000e+00> : vector<16x128xf32>
    %10 = tpu.matmul %8, %9, %cst_8 {dimension_numbers = #tpu.dot_dimension_numbers<[1], [0], [0], [1], [0, 0, 1, 1], [], []>} : vector<16x128xbf16>, vector<128x128xbf16>, vector<16x128xf32> -> vector<16x128xf32>
    %c0_9 = arith.constant 0 : index
    %c0_10 = arith.constant 0 : index
    %11 = vector.load %arg6[%c0_9, %c0_10] : memref<1x128xf32, #tpu.memory_space<vmem>>, vector<1x128xf32>
    %12 = vector.broadcast %11 : vector<1x128xf32> to vector<16x128xf32>
    %13 = arith.addf %10, %12 : vector<16x128xf32>
    %cst_11 = arith.constant 0.000000e+00 : f32
    %14 = vector.broadcast %cst_11 : f32 to vector<16x128xf32>
    %15 = arith.maximumf %13, %14 : vector<16x128xf32>
    %16 = arith.truncf %15 : vector<16x128xf32> to vector<16x128xbf16>
    %c0_12 = arith.constant 0 : index
    %c0_13 = arith.constant 0 : index
    %17 = vector.load %arg7[%c0_12, %c0_13] : memref<128x128xbf16, #tpu.memory_space<vmem>>, vector<128x128xbf16>
    %cst_14 = arith.constant dense<0.000000e+00> : vector<16x128xf32>
    %18 = tpu.matmul %16, %17, %cst_14 {dimension_numbers = #tpu.dot_dimension_numbers<[1], [0], [0], [1], [0, 0, 1, 1], [], []>} : vector<16x128xbf16>, vector<128x128xbf16>, vector<16x128xf32> -> vector<16x128xf32>
    %c0_15 = arith.constant 0 : index
    %c0_16 = arith.constant 0 : index
    %19 = vector.load %arg8[%c0_15, %c0_16] : memref<1x128xf32, #tpu.memory_space<vmem>>, vector<1x128xf32>
    %20 = vector.broadcast %19 : vector<1x128xf32> to vector<16x128xf32>
    %21 = arith.addf %18, %20 : vector<16x128xf32>
    %cst_17 = arith.constant 0.000000e+00 : f32
    %22 = vector.broadcast %cst_17 : f32 to vector<16x128xf32>
    %23 = arith.maximumf %21, %22 : vector<16x128xf32>
    %24 = arith.truncf %23 : vector<16x128xf32> to vector<16x128xbf16>
    %c0_18 = arith.constant 0 : index
    %c0_19 = arith.constant 0 : index
    %25 = vector.load %arg9[%c0_18, %c0_19] : memref<128x256xbf16, #tpu.memory_space<vmem>>, vector<128x256xbf16>
    %cst_20 = arith.constant dense<0.000000e+00> : vector<16x256xf32>
    %26 = tpu.matmul %24, %25, %cst_20 {dimension_numbers = #tpu.dot_dimension_numbers<[1], [0], [0], [1], [0, 0, 1, 1], [], []>} : vector<16x128xbf16>, vector<128x256xbf16>, vector<16x256xf32> -> vector<16x256xf32>
    %c0_21 = arith.constant 0 : index
    %c0_22 = arith.constant 0 : index
    %27 = vector.load %arg10[%c0_21, %c0_22] : memref<1x256xf32, #tpu.memory_space<vmem>>, vector<1x256xf32>
    %28 = vector.broadcast %27 : vector<1x256xf32> to vector<16x256xf32>
    %29 = arith.addf %26, %28 : vector<16x256xf32>
    %30 = vector.extract_strided_slice %29 {offsets = [0, 0], sizes = [16, 128], strides = [1, 1]} : vector<16x256xf32> to vector<16x128xf32>
    %31 = vector.extract_strided_slice %29 {offsets = [0, 128], sizes = [16, 128], strides = [1, 1]} : vector<16x256xf32> to vector<16x128xf32>
    %cst_23 = arith.constant 5.000000e-01 : f32
    %32 = vector.broadcast %cst_23 : f32 to vector<16x128xf32>
    %33 = arith.mulf %32, %31 : vector<16x128xf32>
    %34 = math.exp %33 : vector<16x128xf32>
    %c0_24 = arith.constant 0 : index
    %c0_25 = arith.constant 0 : index
    %35 = vector.load %arg2[%c0_24, %c0_25] : memref<16x128xf32, #tpu.memory_space<vmem>>, vector<16x128xf32>
    %36 = arith.mulf %35, %34 : vector<16x128xf32>
    %37 = arith.addf %36, %30 : vector<16x128xf32>
    %38 = arith.truncf %37 : vector<16x128xf32> to vector<16x128xbf16>
    %c0_26 = arith.constant 0 : index
    %c0_27 = arith.constant 0 : index
    %39 = vector.load %arg11[%c0_26, %c0_27] : memref<128x128xbf16, #tpu.memory_space<vmem>>, vector<128x128xbf16>
    %cst_28 = arith.constant dense<0.000000e+00> : vector<16x128xf32>
    %40 = tpu.matmul %38, %39, %cst_28 {dimension_numbers = #tpu.dot_dimension_numbers<[1], [0], [0], [1], [0, 0, 1, 1], [], []>} : vector<16x128xbf16>, vector<128x128xbf16>, vector<16x128xf32> -> vector<16x128xf32>
    %c0_29 = arith.constant 0 : index
    %c0_30 = arith.constant 0 : index
    %41 = vector.load %arg12[%c0_29, %c0_30] : memref<1x128xf32, #tpu.memory_space<vmem>>, vector<1x128xf32>
    %42 = vector.broadcast %41 : vector<1x128xf32> to vector<16x128xf32>
    %43 = arith.addf %40, %42 : vector<16x128xf32>
    %cst_31 = arith.constant 0.000000e+00 : f32
    %44 = vector.broadcast %cst_31 : f32 to vector<16x128xf32>
    %45 = arith.maximumf %43, %44 : vector<16x128xf32>
    %46 = arith.truncf %45 : vector<16x128xf32> to vector<16x128xbf16>
    %c0_32 = arith.constant 0 : index
    %c0_33 = arith.constant 0 : index
    %47 = vector.load %arg13[%c0_32, %c0_33] : memref<128x128xbf16, #tpu.memory_space<vmem>>, vector<128x128xbf16>
    %cst_34 = arith.constant dense<0.000000e+00> : vector<16x128xf32>
    %48 = tpu.matmul %46, %47, %cst_34 {dimension_numbers = #tpu.dot_dimension_numbers<[1], [0], [0], [1], [0, 0, 1, 1], [], []>} : vector<16x128xbf16>, vector<128x128xbf16>, vector<16x128xf32> -> vector<16x128xf32>
    %c0_35 = arith.constant 0 : index
    %c0_36 = arith.constant 0 : index
    %49 = vector.load %arg14[%c0_35, %c0_36] : memref<1x128xf32, #tpu.memory_space<vmem>>, vector<1x128xf32>
    %50 = vector.broadcast %49 : vector<1x128xf32> to vector<16x128xf32>
    %51 = arith.addf %48, %50 : vector<16x128xf32>
    %cst_37 = arith.constant 0.000000e+00 : f32
    %52 = vector.broadcast %cst_37 : f32 to vector<16x128xf32>
    %53 = arith.maximumf %51, %52 : vector<16x128xf32>
    %54 = arith.truncf %53 : vector<16x128xf32> to vector<16x128xbf16>
    %c0_38 = arith.constant 0 : index
    %c0_39 = arith.constant 0 : index
    %55 = vector.load %arg15[%c0_38, %c0_39] : memref<128x128xbf16, #tpu.memory_space<vmem>>, vector<128x128xbf16>
    %cst_40 = arith.constant dense<0.000000e+00> : vector<16x128xf32>
    %56 = tpu.matmul %54, %55, %cst_40 {dimension_numbers = #tpu.dot_dimension_numbers<[1], [0], [0], [1], [0, 0, 1, 1], [], []>} : vector<16x128xbf16>, vector<128x128xbf16>, vector<16x128xf32> -> vector<16x128xf32>
    %c0_41 = arith.constant 0 : index
    %c0_42 = arith.constant 0 : index
    %57 = vector.load %arg16[%c0_41, %c0_42] : memref<1x128xf32, #tpu.memory_space<vmem>>, vector<1x128xf32>
    %58 = vector.broadcast %57 : vector<1x128xf32> to vector<16x128xf32>
    %59 = arith.addf %56, %58 : vector<16x128xf32>
    %cst_43 = arith.constant 0.000000e+00 : f32
    %60 = vector.broadcast %cst_43 : f32 to vector<16x128xf32>
    %61 = arith.maximumf %59, %60 : vector<16x128xf32>
    %62 = arith.truncf %61 : vector<16x128xf32> to vector<16x128xbf16>
    %c0_44 = arith.constant 0 : index
    %c0_45 = arith.constant 0 : index
    %63 = vector.load %arg17[%c0_44, %c0_45] : memref<128x128xbf16, #tpu.memory_space<vmem>>, vector<128x128xbf16>
    %cst_46 = arith.constant dense<0.000000e+00> : vector<16x128xf32>
    %64 = tpu.matmul %62, %63, %cst_46 {dimension_numbers = #tpu.dot_dimension_numbers<[1], [0], [0], [1], [0, 0, 1, 1], [], []>} : vector<16x128xbf16>, vector<128x128xbf16>, vector<16x128xf32> -> vector<16x128xf32>
    %c0_47 = arith.constant 0 : index
    %c0_48 = arith.constant 0 : index
    %65 = vector.load %arg18[%c0_47, %c0_48] : memref<1x128xf32, #tpu.memory_space<vmem>>, vector<1x128xf32>
    %66 = vector.broadcast %65 : vector<1x128xf32> to vector<16x128xf32>
    %67 = arith.addf %64, %66 : vector<16x128xf32>
    %68 = arith.truncf %67 : vector<16x128xf32> to vector<16x128xbf16>
    %c0_49 = arith.constant 0 : index
    %c0_50 = arith.constant 0 : index
    %69 = vector.load %arg19[%c0_49, %c0_50] : memref<16x128xbf16, #tpu.memory_space<vmem>>, vector<16x128xbf16>
    tpu.vector_store %arg19[%c0_49, %c0_50], %68 {strides = array<i32>} : memref<16x128xbf16, #tpu.memory_space<vmem>>, vector<16x128xbf16>,
    %c0_51 = arith.constant 0 : index
    %c0_52 = arith.constant 0 : index
    %70 = vector.load %arg20[%c0_51, %c0_52] : memref<16x128xf32, #tpu.memory_space<vmem>>, vector<16x128xf32>
    tpu.vector_store %arg20[%c0_51, %c0_52], %30 {strides = array<i32>} : memref<16x128xf32, #tpu.memory_space<vmem>>, vector<16x128xf32>,
    %c0_53 = arith.constant 0 : index
    %c0_54 = arith.constant 0 : index
    %71 = vector.load %arg21[%c0_53, %c0_54] : memref<16x128xf32, #tpu.memory_space<vmem>>, vector<16x128xf32>
    tpu.vector_store %arg21[%c0_53, %c0_54], %31 {strides = array<i32>} : memref<16x128xf32, #tpu.memory_space<vmem>>, vector<16x128xf32>,
    return
  }
  func.func @transform_0(%arg0: i32) -> (i32, i32) {
    %c0_i32 = arith.constant 0 : i32
    %c0_i32_0 = arith.constant 0 : i32
    return %arg0, %c0_i32 : i32, i32
  }
  func.func @transform_1(%arg0: i32) -> (i32, i32) {
    %c0_i32 = arith.constant 0 : i32
    %c0_i32_0 = arith.constant 0 : i32
    return %arg0, %c0_i32 : i32, i32
  }
  func.func @transform_2(%arg0: i32) -> (i32, i32) {
    %c0_i32 = arith.constant 0 : i32
    %c0_i32_0 = arith.constant 0 : i32
    %c0_i32_1 = arith.constant 0 : i32
    return %c0_i32, %c0_i32_0 : i32, i32
  }
  func.func @transform_3(%arg0: i32) -> (i32, i32) {
    %c0_i32 = arith.constant 0 : i32
    %c0_i32_0 = arith.constant 0 : i32
    %c0_i32_1 = arith.constant 0 : i32
    return %c0_i32, %c0_i32_0 : i32, i32
  }
  func.func @transform_4(%arg0: i32) -> (i32, i32) {
    %c0_i32 = arith.constant 0 : i32
    %c0_i32_0 = arith.constant 0 : i32
    %c0_i32_1 = arith.constant 0 : i32
    return %c0_i32, %c0_i32_0 : i32, i32
  }
  func.func @transform_5(%arg0: i32) -> (i32, i32) {
    %c0_i32 = arith.constant 0 : i32
    %c0_i32_0 = arith.constant 0 : i32
    %c0_i32_1 = arith.constant 0 : i32
    return %c0_i32, %c0_i32_0 : i32, i32
  }
  func.func @transform_6(%arg0: i32) -> (i32, i32) {
    %c0_i32 = arith.constant 0 : i32
    %c0_i32_0 = arith.constant 0 : i32
    %c0_i32_1 = arith.constant 0 : i32
    return %c0_i32, %c0_i32_0 : i32, i32
  }
  func.func @transform_7(%arg0: i32) -> (i32, i32) {
    %c0_i32 = arith.constant 0 : i32
    %c0_i32_0 = arith.constant 0 : i32
    %c0_i32_1 = arith.constant 0 : i32
    return %c0_i32, %c0_i32_0 : i32, i32
  }
  func.func @transform_8(%arg0: i32) -> (i32, i32) {
    %c0_i32 = arith.constant 0 : i32
    %c0_i32_0 = arith.constant 0 : i32
    %c0_i32_1 = arith.constant 0 : i32
    return %c0_i32, %c0_i32_0 : i32, i32
  }
  func.func @transform_9(%arg0: i32) -> (i32, i32) {
    %c0_i32 = arith.constant 0 : i32
    %c0_i32_0 = arith.constant 0 : i32
    %c0_i32_1 = arith.constant 0 : i32
    return %c0_i32, %c0_i32_0 : i32, i32
  }
  func.func @transform_10(%arg0: i32) -> (i32, i32) {
    %c0_i32 = arith.constant 0 : i32
    %c0_i32_0 = arith.constant 0 : i32
    %c0_i32_1 = arith.constant 0 : i32
    return %c0_i32, %c0_i32_0 : i32, i32
  }
  func.func @transform_11(%arg0: i32) -> (i32, i32) {
    %c0_i32 = arith.constant 0 : i32
    %c0_i32_0 = arith.constant 0 : i32
    %c0_i32_1 = arith.constant 0 : i32
    return %c0_i32, %c0_i32_0 : i32, i32
  }
  func.func @transform_12(%arg0: i32) -> (i32, i32) {
    %c0_i32 = arith.constant 0 : i32
    %c0_i32_0 = arith.constant 0 : i32
    %c0_i32_1 = arith.constant 0 : i32
    return %c0_i32, %c0_i32_0 : i32, i32
  }
  func.func @transform_13(%arg0: i32) -> (i32, i32) {
    %c0_i32 = arith.constant 0 : i32
    %c0_i32_0 = arith.constant 0 : i32
    %c0_i32_1 = arith.constant 0 : i32
    return %c0_i32, %c0_i32_0 : i32, i32
  }
  func.func @transform_14(%arg0: i32) -> (i32, i32) {
    %c0_i32 = arith.constant 0 : i32
    %c0_i32_0 = arith.constant 0 : i32
    %c0_i32_1 = arith.constant 0 : i32
    return %c0_i32, %c0_i32_0 : i32, i32
  }
  func.func @transform_15(%arg0: i32) -> (i32, i32) {
    %c0_i32 = arith.constant 0 : i32
    %c0_i32_0 = arith.constant 0 : i32
    %c0_i32_1 = arith.constant 0 : i32
    return %c0_i32, %c0_i32_0 : i32, i32
  }
  func.func @transform_16(%arg0: i32) -> (i32, i32) {
    %c0_i32 = arith.constant 0 : i32
    %c0_i32_0 = arith.constant 0 : i32
    %c0_i32_1 = arith.constant 0 : i32
    return %c0_i32, %c0_i32_0 : i32, i32
  }
  func.func @transform_17(%arg0: i32) -> (i32, i32) {
    %c0_i32 = arith.constant 0 : i32
    %c0_i32_0 = arith.constant 0 : i32
    %c0_i32_1 = arith.constant 0 : i32
    return %c0_i32, %c0_i32_0 : i32, i32
  }
  func.func @transform_18(%arg0: i32) -> (i32, i32) {
    %c0_i32 = arith.constant 0 : i32
    %c0_i32_0 = arith.constant 0 : i32
    return %arg0, %c0_i32 : i32, i32
  }
  func.func @transform_19(%arg0: i32) -> (i32, i32) {
    %c0_i32 = arith.constant 0 : i32
    %c0_i32_0 = arith.constant 0 : i32
    return %arg0, %c0_i32 : i32, i32
  }
  func.func @transform_20(%arg0: i32) -> (i32, i32) {
    %c0_i32 = arith.constant 0 : i32
    %c0_i32_0 = arith.constant 0 : i32
    return %arg0, %c0_i32 : i32, i32
  }
}

</mosaic_0001>

<bundles_post_ra>
// kernel: tpu_custom_call.1
= control target key start
LH: loop header
LB: loop body
LE: loop exit
PB: predicated region body
PF: predicated region fallthrough
CT: control target
= control target key end

     0   :  { %s2355_s0 = inlined_call_operand.hbm [shape: bf16[16,128], index: 0, kind: input, shape index: {}]   ;;  %s2356_s1 = inlined_call_operand.hbm [shape: f32[16,128], index: 1, kind: input, shape index: {}]   ;;  %s2357_s2 = inlined_call_operand.hbm [shape: bf16[128,128], index: 2, kind: input, shape index: {}]   ;;  %s2358_s3 = inlined_call_operand.vmem [shape: f32[1,128], index: 3, kind: input, shape index: {}]   ;;  %s2359_s4 = inlined_call_operand.hbm [shape: bf16[128,128], index: 4, kind: input, shape index: {}]   ;;  %s2360_s5 = inlined_call_operand.vmem [shape: f32[1,128], index: 5, kind: input, shape index: {}]   ;;  %s2361_s6 = inlined_call_operand.hbm [shape: bf16[128,128], index: 6, kind: input, shape index: {}]   ;;  %s2362_s7 = inlined_call_operand.vmem [shape: f32[1,128], index: 7, kind: input, shape index: {}]   ;;  %s2363_s8 = inlined_call_operand.hbm [shape: bf16[128,256], index: 8, kind: input, shape index: {}]   ;;  %s2364_s9 = inlined_call_operand.vmem [shape: f32[1,256], index: 9, kind: input, shape index: {}]   ;;  %s2365_s10 = inlined_call_operand.hbm [shape: bf16[128,128], index: 10, kind: input, shape index: {}]   ;;  %s2366_s11 = inlined_call_operand.vmem [shape: f32[1,128], index: 11, kind: input, shape index: {}]   ;;  %s2367_s12 = inlined_call_operand.hbm [shape: bf16[128,128], index: 12, kind: input, shape index: {}]   ;;  %s2368_s13 = inlined_call_operand.vmem [shape: f32[1,128], index: 13, kind: input, shape index: {}]   ;;  %s2369_s14 = inlined_call_operand.hbm [shape: bf16[128,128], index: 14, kind: input, shape index: {}]   ;;  %s2370_s15 = inlined_call_operand.vmem [shape: f32[1,128], index: 15, kind: input, shape index: {}]   ;;  %s2371_s16 = inlined_call_operand.hbm [shape: bf16[128,128], index: 16, kind: input, shape index: {}]   ;;  %s2372_s17 = inlined_call_operand.vmem [shape: f32[1,128], index: 17, kind: input, shape index: {}]   ;;  %s2373_s18 = inlined_call_operand.hbm [shape: bf16[16,128], index: 18, kind: output, shape index: {0}]   ;;  %s2374_s19 = inlined_call_operand.hbm [shape: f32[16,128], index: 19, kind: output, shape index: {1}]   ;;  %s2375_s20 = inlined_call_operand.hbm [shape: f32[16,128], index: 20, kind: output, shape index: {2}]  }
   0x1   :  { %2382 = sst [smem:[#allocation31_spill]] %s2355_s0 }
   0x2   :  { %2383 = sst [smem:[#allocation32_spill]] %s2356_s1 }
   0x3   :  { %2384 = sst [smem:[#allocation33_spill]] %s2357_s2 }
   0x4   :  { %2385 = sst [smem:[#allocation34_spill]] %s2358_s3 }
   0x5   :  { %2386 = sst [smem:[#allocation35_spill]] %s2359_s4 }
   0x6   :  { %2387 = sst [smem:[#allocation36_spill]] %s2372_s17 }
   0x7   :  { %2388 = sst [smem:[#allocation37_spill]] %s2373_s18 }
   0x8   :  { %2389 = sst [smem:[#allocation38_spill]] %s2375_s20 }
   0x9   :  { %26 = vsyncpa [#allocation3], 0 }
   0xa   :  { %27 = vsyncpa [#allocation6], 0 }
   0xb   :  { %28 = vsyncpa [#allocation9], 0 }
   0xc   :  { %29 = vsyncpa [#allocation12], 0 }
   0xd   :  { %30 = vsyncpa [#allocation15], 0 }
   0xe   :  { %31 = vsyncpa [#allocation18], 0 }
   0xf   :  { %32 = vsyncpa [#allocation4], 0 }
  0x10   :  { %33 = vsyncpa [#allocation21], 0  ;;  %s1941_s1 = smov [#allocation5]   ;;  %s2390_s2 = sld [smem:[#allocation32_spill]] }
  0x11   :  { %s51_s22 = sshll.u32 %s1941_s1, 4  ;;  %s52_s22 = int_to_ptr.vmem [resolvable:$true] %s51_s22 }
  0x16   :  { %s1639_s25 = scalar_lea.hbm %s2390_s2, 256 }
  0x17   :  { %p1640_p0 = scmp.ne.s32.totalorder %s2390_s2, %s1639_s25  ;;  %p1643_p1 = scmp.lt.u32.totalorder %s1639_s25, %s2390_s2 }
  0x19   :  { %p1645_p2 = pnand %p1643_p1, %p1640_p0 }
  0x1b   :  { %1648 = shalt.err (!%p1645_p2)
}
  0x1c   :  { %s1649_s4 = scalar_lea.vmem %s52_s22, 256  ;;  %p1654_p4 = scmp.lt.s32.totalorder %s52_s22, %s52_s22 }
  0x1d   :  { %p1650_p3 = scmp.ne.s32.totalorder %s52_s22, %s1649_s4  ;;  %p1655_p5 = scmp.lt.s32.totalorder %s1649_s4, %s1649_s4 }
  0x1f   :  { %p1656_p6 = por %p1655_p5, %p1654_p4 }
  0x21   :  { %p1657_p7 = pnand %p1656_p6, %p1650_p3 }
  0x23   :  { %1660 = shalt.err (!%p1657_p7)
}
  0x24   :  { %s1942_s29 = smov 128   ;;  %s1943_s30 = smov 8  }
  0x25   :  { %57 = dma.hbm_to_vmem [thread:$0]  %s2390_s2, 256, %s52_s22, [#allocation6], %s1942_s29, %s1942_s29, %s1943_s30  }
  0x26   :  { %s1944_s1 = smov [#allocation8]   ;;  %s1945_s24 = smov [#allocation11]  }
  0x27   :  { %s77_s23 = sshll.u32 %s1944_s1, 4  ;;  %s105_s25 = sshll.u32 %s1945_s24, 4  ;;  %s78_s23 = int_to_ptr.vmem [resolvable:$true] %s77_s23  ;;  %s106_s25 = int_to_ptr.vmem [resolvable:$true] %s105_s25 }
  0x28   :  { %s2391_s27 = sld [smem:[#allocation35_spill]] }
  0x2e   :  { %s1661_s28 = scalar_lea.hbm %s2391_s27, 1024 }
  0x2f   :  { %p1662_p8 = scmp.ne.s32.totalorder %s2391_s27, %s1661_s28  ;;  %p1665_p9 = scmp.lt.u32.totalorder %s1661_s28, %s2391_s27 }
  0x31   :  { %p1667_p10 = pnand %p1665_p9, %p1662_p8 }
  0x33   :  { %1670 = shalt.err (!%p1667_p10)
}
  0x34   :  { %s1671_s22 = scalar_lea.vmem %s78_s23, 1024  ;;  %p1676_p12 = scmp.lt.s32.totalorder %s78_s23, %s78_s23 }
  0x35   :  { %p1672_p11 = scmp.ne.s32.totalorder %s78_s23, %s1671_s22  ;;  %p1677_p13 = scmp.lt.s32.totalorder %s1671_s22, %s1671_s22 }
  0x37   :  { %p1678_p0 = por %p1677_p13, %p1676_p12 }
  0x39   :  { %p1679_p1 = pnand %p1678_p0, %p1672_p11 }
  0x3b   :  { %1682 = shalt.err (!%p1679_p1)
}
  0x3c   :  { %s1946_s2 = smov 64   ;;  %s1947_s0 = smov 4  }
  0x3d   :  { %83 = dma.hbm_to_vmem [thread:$0]  %s2391_s27, 1024, %s78_s23, [#allocation9], %s1946_s2, %s1946_s2, %s1947_s0  }
  0x3e   :  { %s1683_s1 = scalar_lea.hbm %s2363_s8, 2048 }
  0x3f   :  { %p1684_p2 = scmp.ne.s32.totalorder %s2363_s8, %s1683_s1  ;;  %p1687_p3 = scmp.lt.u32.totalorder %s1683_s1, %s2363_s8 }
  0x41   :  { %p1689_p4 = pnand %p1687_p3, %p1684_p2 }
  0x43   :  { %1692 = shalt.err (!%p1689_p4)
}
  0x44   :  { %s1693_s4 = scalar_lea.vmem %s106_s25, 2048  ;;  %p1698_p6 = scmp.lt.s32.totalorder %s106_s25, %s106_s25 }
  0x45   :  { %p1694_p5 = scmp.ne.s32.totalorder %s106_s25, %s1693_s4  ;;  %p1699_p7 = scmp.lt.s32.totalorder %s1693_s4, %s1693_s4 }
  0x47   :  { %p1700_p8 = por %p1699_p7, %p1698_p6 }
  0x49   :  { %p1701_p9 = pnand %p1700_p8, %p1694_p5 }
  0x4b   :  { %1704 = shalt.err (!%p1701_p9)
}
  0x4c   :  { %111 = dma.hbm_to_vmem [thread:$0]  %s2363_s8, 2048, %s106_s25, [#allocation12], %s1942_s29, %s1942_s29, %s1943_s30  }
  0x4d   :  { %s1948_s22 = smov [#allocation14]   ;;  %s1949_s21 = smov [#allocation2]  }
  0x4e   :  { %s133_s18 = sshll.u32 %s1948_s22, 4  ;;  %s39_s17 = sshll.u32 %s1949_s21, 4  ;;  %s134_s18 = int_to_ptr.vmem [resolvable:$true] %s133_s18  ;;  %s40_s17 = int_to_ptr.vmem [resolvable:$true] %s39_s17 }
  0x4f   :  { %s1705_s24 = scalar_lea.hbm %s2367_s12, 1024 }
  0x50   :  { %p1706_p10 = scmp.ne.s32.totalorder %s2367_s12, %s1705_s24  ;;  %p1709_p11 = scmp.lt.u32.totalorder %s1705_s24, %s2367_s12 }
  0x52   :  { %p1711_p12 = pnand %p1709_p11, %p1706_p10 }
  0x54   :  { %1714 = shalt.err (!%p1711_p12)
}
  0x55   :  { %s1715_s8 = scalar_lea.vmem %s134_s18, 1024  ;;  %p1720_p0 = scmp.lt.s32.totalorder %s134_s18, %s134_s18 }
  0x56   :  { %p1716_p13 = scmp.ne.s32.totalorder %s134_s18, %s1715_s8  ;;  %p1721_p1 = scmp.lt.s32.totalorder %s1715_s8, %s1715_s8 }
  0x58   :  { %p1722_p2 = por %p1721_p1, %p1720_p0 }
  0x5a   :  { %p1723_p3 = pnand %p1722_p2, %p1716_p13 }
  0x5c   :  { %1726 = shalt.err (!%p1723_p3)
}
  0x5d   :  { %139 = dma.hbm_to_vmem [thread:$0]  %s2367_s12, 1024, %s134_s18, [#allocation15], %s1946_s2, %s1946_s2, %s1947_s0  }
  0x5e   :  { %s2392_s21 = sld [smem:[#allocation31_spill]] }
  0x64   :  { %s1727_s20 = scalar_lea.hbm %s2392_s21, 128 }
  0x65   :  { %p1728_p4 = scmp.ne.s32.totalorder %s2392_s21, %s1727_s20  ;;  %p1731_p5 = scmp.lt.u32.totalorder %s1727_s20, %s2392_s21 }
  0x67   :  { %p1733_p6 = pnand %p1731_p5, %p1728_p4 }
  0x69   :  { %1736 = shalt.err (!%p1733_p6)
}
  0x6a   :  { %s1737_s28 = scalar_lea.vmem %s40_s17, 128  ;;  %p1742_p8 = scmp.lt.s32.totalorder %s40_s17, %s40_s17 }
  0x6b   :  { %p1738_p7 = scmp.ne.s32.totalorder %s40_s17, %s1737_s28  ;;  %p1743_p9 = scmp.lt.s32.totalorder %s1737_s28, %s1737_s28 }
  0x6d   :  { %p1744_p10 = por %p1743_p9, %p1742_p8 }
  0x6f   :  { %p1745_p11 = pnand %p1744_p10, %p1738_p7 }
  0x71   :  { %1748 = shalt.err (!%p1745_p11)
}
  0x72   :  { %45 = dma.hbm_to_vmem [thread:$0]  %s2392_s21, 128, %s40_s17, [#allocation3], %s1946_s2, %s1946_s2, %s1947_s0  }
  0x73   :  { %s1950_s4 = smov [#allocation7]   ;;  %s1951_s25 = smov [#allocation10]  }
  0x74   :  { %s63_s8 = sshll.u32 %s1950_s4, 4  ;;  %s91_s23 = sshll.u32 %s1951_s25, 4  ;;  %s64_s8 = int_to_ptr.vmem [resolvable:$true] %s63_s8  ;;  %s92_s23 = int_to_ptr.vmem [resolvable:$true] %s91_s23 }
  0x75   :  { %s2393_s20 = sld [smem:[#allocation33_spill]] }
  0x7b   :  { %s1749_s1 = scalar_lea.hbm %s2393_s20, 1024 }
  0x7c   :  { %p1750_p12 = scmp.ne.s32.totalorder %s2393_s20, %s1749_s1  ;;  %p1753_p13 = scmp.lt.u32.totalorder %s1749_s1, %s2393_s20 }
  0x7e   :  { %p1755_p0 = pnand %p1753_p13, %p1750_p12 }
  0x80   :  { %1758 = shalt.err (!%p1755_p0)
}
  0x81   :  { %s1759_s17 = scalar_lea.vmem %s64_s8, 1024  ;;  %p1764_p2 = scmp.lt.s32.totalorder %s64_s8, %s64_s8 }
  0x82   :  { %p1760_p1 = scmp.ne.s32.totalorder %s64_s8, %s1759_s17  ;;  %p1765_p3 = scmp.lt.s32.totalorder %s1759_s17, %s1759_s17 }
  0x84   :  { %p1766_p4 = por %p1765_p3, %p1764_p2 }
  0x86   :  { %p1767_p5 = pnand %p1766_p4, %p1760_p1 }
  0x88   :  { %1770 = shalt.err (!%p1767_p5)
}
  0x89   :  { %69 = dma.hbm_to_vmem [thread:$0]  %s2393_s20, 1024, %s64_s8, [#allocation6], %s1946_s2, %s1946_s2, %s1947_s0  }
  0x8a   :  { %s1771_s25 = scalar_lea.hbm %s2361_s6, 1024 }
  0x8b   :  { %p1772_p6 = scmp.ne.s32.totalorder %s2361_s6, %s1771_s25  ;;  %p1775_p7 = scmp.lt.u32.totalorder %s1771_s25, %s2361_s6 }
  0x8d   :  { %p1777_p8 = pnand %p1775_p7, %p1772_p6 }
  0x8f   :  { %1780 = shalt.err (!%p1777_p8)
}
  0x90   :  { %s1781_s3 = scalar_lea.vmem %s92_s23, 1024  ;;  %p1786_p10 = scmp.lt.s32.totalorder %s92_s23, %s92_s23 }
  0x91   :  { %p1782_p9 = scmp.ne.s32.totalorder %s92_s23, %s1781_s3  ;;  %p1787_p11 = scmp.lt.s32.totalorder %s1781_s3, %s1781_s3 }
  0x93   :  { %p1788_p12 = por %p1787_p11, %p1786_p10 }
  0x95   :  { %p1789_p13 = pnand %p1788_p12, %p1782_p9 }
  0x97   :  { %1792 = shalt.err (!%p1789_p13)
}
  0x98   :  { %97 = dma.hbm_to_vmem [thread:$0]  %s2361_s6, 1024, %s92_s23, [#allocation9], %s1946_s2, %s1946_s2, %s1947_s0  }
  0x99   :  { %s1952_s26 = smov [#allocation13]   ;;  %s1953_s17 = smov [#allocation16]  }
  0x9a   :  { %s119_s28 = sshll.u32 %s1952_s26, 4  ;;  %s147_s21 = sshll.u32 %s1953_s17, 4  ;;  %s120_s28 = int_to_ptr.vmem [resolvable:$true] %s119_s28  ;;  %s148_s21 = int_to_ptr.vmem [resolvable:$true] %s147_s21 }
  0x9b   :  { %s1793_s4 = scalar_lea.hbm %s2365_s10, 1024 }
  0x9c   :  { %p1794_p0 = scmp.ne.s32.totalorder %s2365_s10, %s1793_s4  ;;  %p1797_p1 = scmp.lt.u32.totalorder %s1793_s4, %s2365_s10 }
  0x9e   :  { %p1799_p2 = pnand %p1797_p1, %p1794_p0 }
  0xa0   :  { %1802 = shalt.err (!%p1799_p2)
}
  0xa1   :  { %s1803_s6 = scalar_lea.vmem %s120_s28, 1024  ;;  %p1808_p4 = scmp.lt.s32.totalorder %s120_s28, %s120_s28 }
  0xa2   :  { %p1804_p3 = scmp.ne.s32.totalorder %s120_s28, %s1803_s6  ;;  %p1809_p5 = scmp.lt.s32.totalorder %s1803_s6, %s1803_s6 }
  0xa4   :  { %p1810_p6 = por %p1809_p5, %p1808_p4 }
  0xa6   :  { %p1811_p7 = pnand %p1810_p6, %p1804_p3 }
  0xa8   :  { %1814 = shalt.err (!%p1811_p7)
}
  0xa9   :  { %125 = dma.hbm_to_vmem [thread:$0]  %s2365_s10, 1024, %s120_s28, [#allocation12], %s1946_s2, %s1946_s2, %s1947_s0  }
  0xaa   :  { %s1815_s20 = scalar_lea.hbm %s2369_s14, 1024 }
  0xab   :  { %p1816_p8 = scmp.ne.s32.totalorder %s2369_s14, %s1815_s20  ;;  %p1819_p9 = scmp.lt.u32.totalorder %s1815_s20, %s2369_s14 }
  0xad   :  { %p1821_p10 = pnand %p1819_p9, %p1816_p8 }
  0xaf   :  { %1824 = shalt.err (!%p1821_p10)
}
  0xb0   :  { %s1825_s4 = scalar_lea.vmem %s148_s21, 1024  ;;  %p1830_p12 = scmp.lt.s32.totalorder %s148_s21, %s148_s21 }
  0xb1   :  { %p1826_p11 = scmp.ne.s32.totalorder %s148_s21, %s1825_s4  ;;  %p1831_p13 = scmp.lt.s32.totalorder %s1825_s4, %s1825_s4 }
  0xb3   :  { %p1832_p0 = por %p1831_p13, %p1830_p12 }
  0xb5   :  { %p1833_p1 = pnand %p1832_p0, %p1826_p11 }
  0xb7   :  { %1836 = shalt.err (!%p1833_p1)
}
  0xb8   :  { %153 = dma.hbm_to_vmem [thread:$0]  %s2369_s14, 1024, %s148_s21, [#allocation15], %s1946_s2, %s1946_s2, %s1947_s0  }
  0xb9   :  { %s1954_s25 = smov [#allocation17]   ;;  %s1837_s6 = scalar_lea.hbm %s2371_s16, 1024 }
  0xba   :  { %s161_s27 = sshll.u32 %s1954_s25, 4  ;;  %p1838_p2 = scmp.ne.s32.totalorder %s2371_s16, %s1837_s6  ;;  %s162_s27 = int_to_ptr.vmem [resolvable:$true] %s161_s27 }
  0xbb   :  { %p1841_p3 = scmp.lt.u32.totalorder %s1837_s6, %s2371_s16 }
  0xbd   :  { %p1843_p4 = pnand %p1841_p3, %p1838_p2 }
  0xbf   :  { %1846 = shalt.err (!%p1843_p4)
}
  0xc0   :  { %s1847_s20 = scalar_lea.vmem %s162_s27, 1024  ;;  %p1852_p6 = scmp.lt.s32.totalorder %s162_s27, %s162_s27 }
  0xc1   :  { %p1848_p5 = scmp.ne.s32.totalorder %s162_s27, %s1847_s20  ;;  %p1853_p7 = scmp.lt.s32.totalorder %s1847_s20, %s1847_s20 }
  0xc3   :  { %p1854_p8 = por %p1853_p7, %p1852_p6 }
  0xc5   :  { %p1855_p9 = pnand %p1854_p8, %p1848_p5 }
  0xc7   :  { %1858 = shalt.err (!%p1855_p9)
}
  0xc8   :  { %167 = dma.hbm_to_vmem [thread:$0]  %s2371_s16, 1024, %s162_s27, [#allocation18], %s1946_s2, %s1946_s2, %s1947_s0  }
  0xc9   :  { %1925 = dma.done.wait [#allocation3], 128  }
  0xca   :  { %1926 = vsyncadd [#allocation3], 4294967168 }
  0xcb   :  { %1927 = dma.done.wait [#allocation6], 1280  }
  0xcc   :  { %1928 = vsyncadd [#allocation6], 4294966016 }
  0xcd   :  { %1929 = dma.done.wait [#allocation9], 2048  }
  0xce   :  { %1930 = vsyncadd [#allocation9], 4294965248 }
  0xcf   :  { %1931 = dma.done.wait [#allocation12], 3072  }
  0xd0   :  { %1932 = vsyncadd [#allocation12], 4294964224 }
  0xd1   :  { %1933 = dma.done.wait [#allocation15], 2048  }
  0xd2   :  { %1934 = vsyncadd [#allocation15], 4294965248 }
  0xd3   :  { %1935 = dma.done.wait [#allocation18], 1024  }
  0xd4   :  { %1936 = vsyncadd [#allocation18], 4294966272  ;;  %v1955_v0 = vmov 0.0   ;;  %vm1956_vm0 = vmmov 0   ;;  %v1554_v1 = vld [vmem:[#allocation7] sm:$0xff]   ;;  %v1555_v2 = vld [vmem:[#allocation7 + $0x8] sm:$0xff]  }
  0xd5   :  { %1394 = vmatprep.subr.bf16.mxu0 %v1955_v0  ;;  %1410 = vmatprep.mubr.msk.bf16.mxu0 %vm1956_vm0, %v1955_v0  ;;  %v1556_v3 = vld [vmem:[#allocation7 + $0x10] sm:$0xff]   ;;  %v1563_v4 = vld [vmem:[#allocation8] sm:$0xff]   ;;  %v1557_v5 = vld [vmem:[#allocation7 + $0x18] sm:$0xff]   ;;  %s2394_s17 = sld [smem:[#allocation34_spill]]  ;;  %v1957_v62 = vmov 0  }
  0xd6   :  { %1414 = vmatprep.subr.bf16.mxu1 %v1955_v0  ;;  %1430 = vmatprep.mubr.msk.bf16.mxu1 %vm1956_vm0, %v1955_v0  ;;  %v1564_v6 = vld [vmem:[#allocation8 + $0x8] sm:$0xff]   ;;  %v1558_v7 = vld [vmem:[#allocation7 + $0x20] sm:$0xff]   ;;  %v1565_v8 = vld [vmem:[#allocation8 + $0x10] sm:$0xff]  }
  0xd7   :  { %1395 = vmatpush3.bf16.msra.mxu0 %v1554_v1  ;;  %1415 = vmatpush3.bf16.msra.mxu1 %v1563_v4  ;;  %v1559_v9 = vld [vmem:[#allocation7 + $0x28] sm:$0xff]   ;;  %v1566_v10 = vld [vmem:[#allocation8 + $0x18] sm:$0xff]   ;;  %v1560_v11 = vld [vmem:[#allocation7 + $0x30] sm:$0xff]  }
  0xd8   :  { %1396 = vmatprep.subr.bf16.mxu0 %v1955_v0  ;;  %1416 = vmatprep.subr.bf16.mxu1 %v1955_v0  ;;  %v1567_v12 = vld [vmem:[#allocation8 + $0x20] sm:$0xff]   ;;  %v1561_v13 = vld [vmem:[#allocation7 + $0x38] sm:$0xff]   ;;  %v1568_v14 = vld [vmem:[#allocation8 + $0x28] sm:$0xff]  }
  0xd9   :  { %v1562_v15 = vld [vmem:[#allocation2] sm:$0xff]   ;;  %v1569_v16 = vld [vmem:[#allocation8 + $0x30] sm:$0xff]   ;;  %v1570_v17 = vld [vmem:[#allocation8 + $0x38] sm:$0xff]  }
  0xda   :  { %v1571_v18 = vld [vmem:[#allocation10] sm:$0xff]   ;;  %v1572_v19 = vld [vmem:[#allocation10 + $0x8] sm:$0xff]   ;;  %v1573_v20 = vld [vmem:[#allocation10 + $0x10] sm:$0xff]  }
  0xdb   :  { %1397 = vmatpush3.bf16.msra.mxu0 %v1555_v2  ;;  %1417 = vmatpush3.bf16.msra.mxu1 %v1564_v6  ;;  %v1574_v21 = vld [vmem:[#allocation10 + $0x18] sm:$0xff]   ;;  %v1575_v22 = vld [vmem:[#allocation10 + $0x20] sm:$0xff]   ;;  %v1576_v23 = vld [vmem:[#allocation10 + $0x28] sm:$0xff]  }
  0xdc   :  { %1398 = vmatprep.subr.bf16.mxu0 %v1955_v0  ;;  %1418 = vmatprep.subr.bf16.mxu1 %v1955_v0  ;;  %v1242_v24 = vld [vmem:[%s2394_s17] ss:$0 sm:$0xff]  ;;  %v1577_v34 = vld [vmem:[#allocation10 + $0x30] sm:$0xff]   ;;  %v1578_v35 = vld [vmem:[#allocation10 + $0x38] sm:$0xff]  }
  0xdd   :  { %v1579_v36 = vld [vmem:[#allocation11] ss:$8 sps:$4 sm:$0xff]   ;;  %v1581_v37 = vld [vmem:[#allocation11 + $0x4] ss:$8 sps:$4 sm:$0xff]   ;;  %v1584_v38 = vld [vmem:[#allocation11 + $0x14] ss:$8 sps:$4 sm:$0xff]  }
  0xde   :  { %v1582_v39 = vld [vmem:[#allocation11 + $0x10] ss:$8 sps:$4 sm:$0xff]   ;;  %v1587_v40 = vld [vmem:[#allocation11 + $0x24] ss:$8 sps:$4 sm:$0xff]   ;;  %v1585_v41 = vld [vmem:[#allocation11 + $0x20] ss:$8 sps:$4 sm:$0xff]  }
  0xdf   :  { %1399 = vmatpush3.bf16.msra.mxu0 %v1556_v3  ;;  %1419 = vmatpush3.bf16.msra.mxu1 %v1565_v8  ;;  %v1590_v42 = vld [vmem:[#allocation11 + $0x34] ss:$8 sps:$4 sm:$0xff]   ;;  %v1588_v43 = vld [vmem:[#allocation11 + $0x30] ss:$8 sps:$4 sm:$0xff]   ;;  %v1593_v44 = vld [vmem:[#allocation11 + $0x44] ss:$8 sps:$4 sm:$0xff]  }
  0xe0   :  { %1400 = vmatprep.subr.bf16.mxu0 %v1955_v0  ;;  %1420 = vmatprep.subr.bf16.mxu1 %v1955_v0  ;;  %v1591_v45 = vld [vmem:[#allocation11 + $0x40] ss:$8 sps:$4 sm:$0xff]   ;;  %v1596_v46 = vld [vmem:[#allocation11 + $0x54] ss:$8 sps:$4 sm:$0xff]   ;;  %v1594_v47 = vld [vmem:[#allocation11 + $0x50] ss:$8 sps:$4 sm:$0xff]  }
  0xe1   :  { %v1252_v48 = vld [vmem:[%s2360_s5] ss:$0 sm:$0xff]  ;;  %v1599_v58 = vld [vmem:[#allocation11 + $0x64] ss:$8 sps:$4 sm:$0xff]   ;;  %v1602_v60 = vld [vmem:[#allocation11 + $0x74] ss:$8 sps:$4 sm:$0xff]  }
  0xe2   :  { %v1597_v59 = vld [vmem:[#allocation11 + $0x60] ss:$8 sps:$4 sm:$0xff]   ;;  %v1600_v61 = vld [vmem:[#allocation11 + $0x70] ss:$8 sps:$4 sm:$0xff]  }
  0xe3   :  { %1401 = vmatpush3.bf16.msra.mxu0 %v1557_v5  ;;  %1421 = vmatpush3.bf16.msra.mxu1 %v1566_v10  ;;  %v1603_v63 = vld [vmem:[#allocation13] sm:$0xff]   ;;  %v1261_v1 = vld [vmem:[%s2362_s7] ss:$0 sm:$0xff] }
  0xe4   :  { %1402 = vmatprep.subr.bf16.mxu0 %v1955_v0  ;;  %1422 = vmatprep.subr.bf16.mxu1 %v1955_v0 }
  0xe7   :  { %1403 = vmatpush3.bf16.msra.mxu0 %v1558_v7  ;;  %1423 = vmatpush3.bf16.msra.mxu1 %v1567_v12  ;;  %v1605_v12 = vld [vmem:[#allocation13 + $0x10] sm:$0xff]  }
  0xe8   :  { %1404 = vmatprep.subr.bf16.mxu0 %v1955_v0  ;;  %1424 = vmatprep.subr.bf16.mxu1 %v1955_v0 }
  0xeb   :  { %1405 = vmatpush3.bf16.msra.mxu0 %v1559_v9  ;;  %1425 = vmatpush3.bf16.msra.mxu1 %v1568_v14  ;;  %v1607_v14 = vld [vmem:[#allocation13 + $0x20] sm:$0xff]  }
  0xec   :  { %1406 = vmatprep.subr.bf16.mxu0 %v1955_v0  ;;  %1426 = vmatprep.subr.bf16.mxu1 %v1955_v0 }
  0xef   :  { %1407 = vmatpush3.bf16.msra.mxu0 %v1560_v11  ;;  %1427 = vmatpush3.bf16.msra.mxu1 %v1569_v16  ;;  %v1604_v11 = vld [vmem:[#allocation13 + $0x8] sm:$0xff]   ;;  %v1609_v16 = vld [vmem:[#allocation13 + $0x30] sm:$0xff]  }
  0xf0   :  { %1408 = vmatprep.subr.bf16.mxu0 %v1955_v0  ;;  %1428 = vmatprep.subr.bf16.mxu1 %v1955_v0 }
  0xf3   :  { %1409 = vmatpush3.bf16.msra.mxu0 %v1561_v13  ;;  %1429 = vmatpush3.bf16.msra.mxu1 %v1570_v17  ;;  %v1606_v13 = vld [vmem:[#allocation13 + $0x18] sm:$0xff]  }
  0xf4   :  { %1434 = vmatprep.subr.bf16.mxu0 %v1955_v0  ;;  %662 = vmatprep.subr.bf16.mxu1 %v1581_v37  ;;  %v1610_v17 = vld [vmem:[#allocation13 + $0x38] sm:$0xff]  }
  0xf6   :  { %1411 = vmatmul.mubr.bf16.vlgmr.msra.gmra.mrb[0].mxu0 %v1562_v15  ;;  %v1608_v15 = vld [vmem:[#allocation13 + $0x28] sm:$0xff]  }
  0xf7   :  { %1450 = vmatprep.mubr.msk.bf16.mxu0 %vm1956_vm0, %v1955_v0  ;;  %1435 = vmatpush3.bf16.msra.mxu0 %v1571_v18  ;;  %v1611_v18 = vld [vmem:[#allocation14] sm:$0xff]  }
  0xf8   :  { %1436 = vmatprep.subr.bf16.mxu0 %v1955_v0 }
  0xfb   :  { %1437 = vmatpush3.bf16.msra.mxu0 %v1572_v19  ;;  %v1612_v19 = vld [vmem:[#allocation14 + $0x8] sm:$0xff]  }
  0xfc   :  { %1438 = vmatprep.subr.bf16.mxu0 %v1955_v0 }
  0xff   :  { %1439 = vmatpush3.bf16.msra.mxu0 %v1573_v20  ;;  %v1613_v20 = vld [vmem:[#allocation14 + $0x10] sm:$0xff]  }
 0x100   :  { %1440 = vmatprep.subr.bf16.mxu0 %v1955_v0 }
 0x103   :  { %1441 = vmatpush3.bf16.msra.mxu0 %v1574_v21  ;;  %v1614_v21 = vld [vmem:[#allocation14 + $0x18] sm:$0xff]  }
 0x104   :  { %1442 = vmatprep.subr.bf16.mxu0 %v1955_v0 }
 0x107   :  { %1443 = vmatpush3.bf16.msra.mxu0 %v1575_v22  ;;  %v1615_v22 = vld [vmem:[#allocation14 + $0x20] sm:$0xff]  }
 0x108   :  { %1444 = vmatprep.subr.bf16.mxu0 %v1955_v0 }
 0x10b   :  { %1445 = vmatpush3.bf16.msra.mxu0 %v1576_v23  ;;  %v1616_v23 = vld [vmem:[#allocation14 + $0x28] sm:$0xff]  }
 0x10c   :  { %1446 = vmatprep.subr.bf16.mxu0 %v1955_v0 }
 0x10f   :  { %1447 = vmatpush3.bf16.msra.mxu0 %v1577_v34 }
 0x110   :  { %1448 = vmatprep.subr.bf16.mxu0 %v1955_v0 }
 0x113   :  { %1449 = vmatpush3.bf16.msra.mxu0 %v1578_v35 }
 0x114   :  { %1454 = vmatprep.subr.bf16.mxu0 %v1955_v0 }
 0x1c9   :  { %v314_v25 = vpop.f32.mrb[0].mxu0 }
 0x1ca   :  { %v315_v26 = vadd.f32 %v1242_v24, %v314_v25  ;;  %v1412_v27 = vpop.f32.mrb[1].mxu0 }
 0x1cb   :  { %v317_v28 = vpop.f32.mrb[2].mxu0  ;;  %v570_v27 = vld [vmem:[%s2364_s9] sm:$0x3] }
 0x1cc   :  { %v318_v29 = vadd.f32 %v1242_v24, %v317_v28  ;;  %v1413_v30 = vpop.f32.mrb[3].mxu0  ;;  %v321_v31 = vmax.f32 %v315_v26, 0.0  ;;  %v572_v24 = vlaneseq }
 0x1ce   :  { %v322_v32 = vmax.f32 %v318_v29, 0.0  ;;  %v573_v25 = vshrl.u32 %v572_v24, 7 }
 0x1d0   :  { %v323_v33 = vpack.c.bf16 %v322_v32, %v321_v31  ;;  %v574_v26 = vsub.s32 0, %v573_v25  ;;  %v578_v28 = vsub.s32 1, %v573_v25  ;;  %v1633_v25 = vld [vmem:[#allocation17 + $0x30] sm:$0xff]  }
 0x1d2   :  { %1431 = vmatmul.mubr.bf16.vlgmr.msra.gmra.mrb[0].mxu1 %v323_v33  ;;  %v575_v29 = vrot.slane %v570_v27, %v574_v26  ;;  %v579_v30 = vrot.slane %v570_v27, %v578_v28  ;;  %v1634_v26 = vld [vmem:[#allocation17 + $0x38] sm:$0xff]   ;;  %v1304_v27 = vld [vmem:[%s2370_s15] ss:$0 sm:$0xff] }
 0x1d3   :  { %663 = vmatpush1.bf16.msra.mxu1 %v1579_v36  ;;  %694 = vmatprep.mubr.bf16.mxu1 %v1957_v62 }
 0x1d4   :  { %664 = vmatprep.subr.bf16.mxu1 %v1584_v38 }
 0x1d7   :  { %665 = vmatpush1.bf16.msra.mxu1 %v1582_v39 }
 0x1d8   :  { %666 = vmatprep.subr.bf16.mxu1 %v1587_v40 }
 0x1db   :  { %667 = vmatpush1.bf16.msra.mxu1 %v1585_v41 }
 0x1dc   :  { %668 = vmatprep.subr.bf16.mxu1 %v1590_v42 }
 0x1df   :  { %669 = vmatpush1.bf16.msra.mxu1 %v1588_v43  ;;  %v711_v43 = vld [vmem:[#allocation5] sm:$0xff] }
 0x1e0   :  { %670 = vmatprep.subr.bf16.mxu1 %v1593_v44 }
 0x1e3   :  { %671 = vmatpush1.bf16.msra.mxu1 %v1591_v45  ;;  %v712_v45 = vld [vmem:[#allocation5 + $0x8] sm:$0xff] }
 0x1e4   :  { %672 = vmatprep.subr.bf16.mxu1 %v1596_v46 }
 0x1e7   :  { %673 = vmatpush1.bf16.msra.mxu1 %v1594_v47 }
 0x1e8   :  { %674 = vmatprep.subr.bf16.mxu1 %v1599_v58  ;;  %v1623_v58 = vld [vmem:[#allocation16 + $0x20] sm:$0xff]  }
 0x1eb   :  { %675 = vmatpush1.bf16.msra.mxu1 %v1597_v59  ;;  %v1624_v59 = vld [vmem:[#allocation16 + $0x28] sm:$0xff]  }
 0x1ec   :  { %676 = vmatprep.subr.bf16.mxu1 %v1602_v60  ;;  %v1286_v60 = vld [vmem:[%s2366_s11] ss:$0 sm:$0xff] }
 0x1ef   :  { %677 = vmatpush1.bf16.msra.mxu1 %v1600_v61 }
 0x1f0   :  { %1474 = vmatprep.subr.bf16.mxu1 %v1955_v0 }
 0x2a5   :  { %v429_v49 = vpop.f32.mrb[0].mxu1 }
 0x2a6   :  { %v430_v50 = vadd.f32 %v1252_v48, %v429_v49  ;;  %v1432_v51 = vpop.f32.mrb[1].mxu1 }
 0x2a7   :  { %v432_v52 = vpop.f32.mrb[2].mxu1 }
 0x2a8   :  { %v433_v53 = vadd.f32 %v1252_v48, %v432_v52  ;;  %v1433_v54 = vpop.f32.mrb[3].mxu1  ;;  %v436_v55 = vmax.f32 %v430_v50, 0.0  ;;  %v1617_v52 = vld [vmem:[#allocation14 + $0x30] sm:$0xff]  }
 0x2a9   :  { %v1619_v54 = vld [vmem:[#allocation16] sm:$0xff]  }
 0x2aa   :  { %v437_v56 = vmax.f32 %v433_v53, 0.0  ;;  %v1618_v53 = vld [vmem:[#allocation14 + $0x38] sm:$0xff]  }
 0x2ac   :  { %v438_v57 = vpack.c.bf16 %v437_v56, %v436_v55  ;;  %v1620_v55 = vld [vmem:[#allocation16 + $0x8] sm:$0xff]   ;;  %v1621_v56 = vld [vmem:[#allocation16 + $0x10] sm:$0xff]  }
 0x2ae   :  { %1451 = vmatmul.mubr.bf16.vlgmr.msra.gmra.mrb[4].mxu0 %v438_v57  ;;  %v1622_v57 = vld [vmem:[#allocation16 + $0x18] sm:$0xff]  }
 0x2af   :  { %1470 = vmatprep.mubr.msk.bf16.mxu0 %vm1956_vm0, %v1955_v0  ;;  %1455 = vmatpush3.bf16.msra.mxu0 %v1603_v63 }
 0x2b0   :  { %1456 = vmatprep.subr.bf16.mxu0 %v1955_v0 }
 0x2b3   :  { %1457 = vmatpush3.bf16.msra.mxu0 %v1604_v11  ;;  %v1629_v11 = vld [vmem:[#allocation17 + $0x10] sm:$0xff]  }
 0x2b4   :  { %1458 = vmatprep.subr.bf16.mxu0 %v1955_v0 }
 0x2b7   :  { %1459 = vmatpush3.bf16.msra.mxu0 %v1605_v12  ;;  %v1630_v12 = vld [vmem:[#allocation17 + $0x18] sm:$0xff]  }
 0x2b8   :  { %1460 = vmatprep.subr.bf16.mxu0 %v1955_v0 }
 0x2bb   :  { %1461 = vmatpush3.bf16.msra.mxu0 %v1606_v13  ;;  %v1631_v13 = vld [vmem:[#allocation17 + $0x20] sm:$0xff]  }
 0x2bc   :  { %1462 = vmatprep.subr.bf16.mxu0 %v1955_v0 }
 0x2bf   :  { %1463 = vmatpush3.bf16.msra.mxu0 %v1607_v14  ;;  %v1632_v14 = vld [vmem:[#allocation17 + $0x28] sm:$0xff]  }
 0x2c0   :  { %1464 = vmatprep.subr.bf16.mxu0 %v1955_v0 }
 0x2c3   :  { %1465 = vmatpush3.bf16.msra.mxu0 %v1608_v15  ;;  %v1295_v15 = vld [vmem:[%s2368_s13] ss:$0 sm:$0xff]  ;;  %s1958_s13 = smov [#allocation20]  }
 0x2c4   :  { %1466 = vmatprep.subr.bf16.mxu0 %v1955_v0  ;;  %s1206_s1 = sshll.u32 %s1958_s13, 4  ;;  %s1207_s1 = int_to_ptr.vmem [resolvable:$true] %s1206_s1 }
 0x2c5   :  { %s1859_s6 = scalar_lea.vmem %s1207_s1, 256  ;;  %p1864_p11 = scmp.lt.s32.totalorder %s1207_s1, %s1207_s1 }
 0x2c6   :  { %p1860_p10 = scmp.ne.s32.totalorder %s1207_s1, %s1859_s6  ;;  %p1865_p12 = scmp.lt.s32.totalorder %s1859_s6, %s1859_s6 }
 0x2c7   :  { %1467 = vmatpush3.bf16.msra.mxu0 %v1609_v16 }
 0x2c8   :  { %1468 = vmatprep.subr.bf16.mxu0 %v1955_v0  ;;  %p1866_p13 = por %p1865_p12, %p1864_p11 }
 0x2ca   :  { %p1867_p0 = pnand %p1866_p13, %p1860_p10 }
 0x2cb   :  { %1469 = vmatpush3.bf16.msra.mxu0 %v1610_v17 }
 0x2cc   :  { %1494 = vmatprep.subr.bf16.mxu0 %v1955_v0 }
 0x381   :  { %v544_v2 = vpop.f32.mrb[4].mxu0 }
 0x382   :  { %v545_v3 = vadd.f32 %v1261_v1, %v544_v2  ;;  %v1452_v4 = vpop.f32.mrb[5].mxu0 }
 0x383   :  { %v547_v5 = vpop.f32.mrb[6].mxu0 }
 0x384   :  { %v548_v6 = vadd.f32 %v1261_v1, %v547_v5  ;;  %v1453_v7 = vpop.f32.mrb[7].mxu0  ;;  %v551_v8 = vmax.f32 %v545_v3, 0.0 }
 0x385   :  { %v1625_v7 = vld [vmem:[#allocation16 + $0x30] sm:$0xff]  }
 0x386   :  { %v552_v9 = vmax.f32 %v548_v6, 0.0 }
 0x388   :  { %v553_v10 = vpack.c.bf16 %v552_v9, %v551_v8  ;;  %v1626_v8 = vld [vmem:[#allocation16 + $0x38] sm:$0xff]   ;;  %v1627_v9 = vld [vmem:[#allocation17] sm:$0xff]  }
 0x38a   :  { %695 = vmatmul.mubr.bf16.vlgmr.msra.gmra.mrb[4].mxu1 %v553_v10  ;;  %v1628_v10 = vld [vmem:[#allocation17 + $0x8] sm:$0xff]  }
 0x38b   :  { %1490 = vmatprep.mubr.msk.bf16.mxu1 %vm1956_vm0, %v1955_v0  ;;  %1475 = vmatpush3.bf16.msra.mxu1 %v1611_v18 }
 0x38c   :  { %1476 = vmatprep.subr.bf16.mxu1 %v1955_v0 }
 0x38f   :  { %1477 = vmatpush3.bf16.msra.mxu1 %v1612_v19 }
 0x390   :  { %1478 = vmatprep.subr.bf16.mxu1 %v1955_v0 }
 0x393   :  { %1479 = vmatpush3.bf16.msra.mxu1 %v1613_v20 }
 0x394   :  { %1480 = vmatprep.subr.bf16.mxu1 %v1955_v0 }
 0x397   :  { %1481 = vmatpush3.bf16.msra.mxu1 %v1614_v21 }
 0x398   :  { %1482 = vmatprep.subr.bf16.mxu1 %v1955_v0 }
 0x39b   :  { %1483 = vmatpush3.bf16.msra.mxu1 %v1615_v22 }
 0x39c   :  { %1484 = vmatprep.subr.bf16.mxu1 %v1955_v0 }
 0x39f   :  { %1485 = vmatpush3.bf16.msra.mxu1 %v1616_v23 }
 0x3a0   :  { %1486 = vmatprep.subr.bf16.mxu1 %v1955_v0 }
 0x3a3   :  { %1487 = vmatpush3.bf16.msra.mxu1 %v1617_v52 }
 0x3a4   :  { %1488 = vmatprep.subr.bf16.mxu1 %v1955_v0 }
 0x3a7   :  { %1489 = vmatpush3.bf16.msra.mxu1 %v1618_v53 }
 0x3a8   :  { %1514 = vmatprep.subr.bf16.mxu1 %v1955_v0 }
 0x45d   :  { %v696_v31 = vpop.f32.mrb[4].mxu1 }
 0x45e   :  { %v697_v32 = vadd.f32 %v696_v31, %v575_v29  ;;  %v698_v33 = vpop.f32.mrb[5].mxu1 }
 0x45f   :  { %v699_v34 = vadd.f32 %v698_v33, %v579_v30  ;;  %v700_v35 = vpop.f32.mrb[6].mxu1 }
 0x460   :  { %1185 = vst [vmem:[#allocation20] sm:$0xff] %v697_v32  ;;  %v701_v36 = vadd.f32 %v700_v35, %v575_v29  ;;  %v702_v37 = vpop.f32.mrb[7].mxu1 }
 0x461   :  { %v705_v38 = vmul.f32 0.5, %v699_v34  ;;  %1187 = vst [vmem:[#allocation22] sm:$0xff] %v699_v34  ;;  %v703_v39 = vadd.f32 %v702_v37, %v579_v30 }
 0x462   :  { %1186 = vst [vmem:[#allocation20 + $0x8] sm:$0xff] %v701_v36 }
 0x463   :  { %v707_v40 = vmul.f32 1.442695, %v705_v38  ;;  %v706_v41 = vmul.f32 0.5, %v703_v39  ;;  %1188 = vst [vmem:[#allocation22 + $0x8] sm:$0xff] %v703_v39 }
 0x465   :  { %1635 = vpow2.f32 %v707_v40  ;;  %v709_v42 = vmul.f32 1.442695, %v706_v41 }
 0x467   :  { %1637 = vpow2.f32 %v709_v42 }
 0x46f   :  { %v1636_v44 = vpop.eup %1635 }
 0x470   :  { %v713_v46 = vmul.f32 %v1636_v44, %v711_v43 }
 0x471   :  { %v1638_v47 = vpop.eup %1637 }
 0x472   :  { %v714_v48 = vmul.f32 %v1638_v47, %v712_v45  ;;  %v715_v49 = vadd.f32 %v713_v46, %v697_v32 }
 0x474   :  { %v716_v50 = vadd.f32 %v714_v48, %v701_v36 }
 0x476   :  { %v717_v51 = vpack.c.bf16 %v716_v50, %v715_v49 }
 0x478   :  { %1471 = vmatmul.mubr.bf16.vlgmr.msra.gmra.mrb[8].mxu0 %v717_v51 }
 0x479   :  { %1510 = vmatprep.mubr.msk.bf16.mxu0 %vm1956_vm0, %v1955_v0  ;;  %1495 = vmatpush3.bf16.msra.mxu0 %v1619_v54 }
 0x47a   :  { %1496 = vmatprep.subr.bf16.mxu0 %v1955_v0 }
 0x47d   :  { %1497 = vmatpush3.bf16.msra.mxu0 %v1620_v55 }
 0x47e   :  { %1498 = vmatprep.subr.bf16.mxu0 %v1955_v0 }
 0x481   :  { %1499 = vmatpush3.bf16.msra.mxu0 %v1621_v56 }
 0x482   :  { %1500 = vmatprep.subr.bf16.mxu0 %v1955_v0 }
 0x485   :  { %1501 = vmatpush3.bf16.msra.mxu0 %v1622_v57 }
 0x486   :  { %1502 = vmatprep.subr.bf16.mxu0 %v1955_v0 }
 0x489   :  { %1503 = vmatpush3.bf16.msra.mxu0 %v1623_v58 }
 0x48a   :  { %1504 = vmatprep.subr.bf16.mxu0 %v1955_v0 }
 0x48d   :  { %1505 = vmatpush3.bf16.msra.mxu0 %v1624_v59 }
 0x48e   :  { %1506 = vmatprep.subr.bf16.mxu0 %v1955_v0 }
 0x491   :  { %1507 = vmatpush3.bf16.msra.mxu0 %v1625_v7 }
 0x492   :  { %1508 = vmatprep.subr.bf16.mxu0 %v1955_v0 }
 0x495   :  { %1509 = vmatpush3.bf16.msra.mxu0 %v1626_v8 }
 0x54b   :  { %v823_v61 = vpop.f32.mrb[8].mxu0 }
 0x54c   :  { %v824_v62 = vadd.f32 %v1286_v60, %v823_v61  ;;  %v1472_v63 = vpop.f32.mrb[9].mxu0 }
 0x54d   :  { %v826_v1 = vpop.f32.mrb[10].mxu0 }
 0x54e   :  { %v827_v2 = vadd.f32 %v1286_v60, %v826_v1  ;;  %v1473_v3 = vpop.f32.mrb[11].mxu0  ;;  %v830_v4 = vmax.f32 %v824_v62, 0.0 }
 0x550   :  { %v831_v5 = vmax.f32 %v827_v2, 0.0 }
 0x552   :  { %v832_v6 = vpack.c.bf16 %v831_v5, %v830_v4 }
 0x554   :  { %1491 = vmatmul.mubr.bf16.vlgmr.msra.gmra.mrb[8].mxu1 %v832_v6 }
 0x555   :  { %1530 = vmatprep.mubr.msk.bf16.mxu1 %vm1956_vm0, %v1955_v0  ;;  %1515 = vmatpush3.bf16.msra.mxu1 %v1627_v9 }
 0x556   :  { %1516 = vmatprep.subr.bf16.mxu1 %v1955_v0 }
 0x559   :  { %1517 = vmatpush3.bf16.msra.mxu1 %v1628_v10 }
 0x55a   :  { %1518 = vmatprep.subr.bf16.mxu1 %v1955_v0 }
 0x55d   :  { %1519 = vmatpush3.bf16.msra.mxu1 %v1629_v11 }
 0x55e   :  { %1520 = vmatprep.subr.bf16.mxu1 %v1955_v0 }
 0x561   :  { %1521 = vmatpush3.bf16.msra.mxu1 %v1630_v12 }
 0x562   :  { %1522 = vmatprep.subr.bf16.mxu1 %v1955_v0 }
 0x565   :  { %1523 = vmatpush3.bf16.msra.mxu1 %v1631_v13 }
 0x566   :  { %1524 = vmatprep.subr.bf16.mxu1 %v1955_v0 }
 0x569   :  { %1525 = vmatpush3.bf16.msra.mxu1 %v1632_v14 }
 0x56a   :  { %1526 = vmatprep.subr.bf16.mxu1 %v1955_v0 }
 0x56d   :  { %1527 = vmatpush3.bf16.msra.mxu1 %v1633_v25 }
 0x56e   :  { %1528 = vmatprep.subr.bf16.mxu1 %v1955_v0 }
 0x571   :  { %1529 = vmatpush3.bf16.msra.mxu1 %v1634_v26 }
 0x627   :  { %v938_v16 = vpop.f32.mrb[8].mxu1 }
 0x628   :  { %v939_v17 = vadd.f32 %v1295_v15, %v938_v16  ;;  %v1492_v18 = vpop.f32.mrb[9].mxu1 }
 0x629   :  { %v941_v19 = vpop.f32.mrb[10].mxu1 }
 0x62a   :  { %v942_v20 = vadd.f32 %v1295_v15, %v941_v19  ;;  %v1493_v21 = vpop.f32.mrb[11].mxu1  ;;  %v945_v22 = vmax.f32 %v939_v17, 0.0 }
 0x62c   :  { %v946_v23 = vmax.f32 %v942_v20, 0.0 }
 0x62e   :  { %v947_v24 = vpack.c.bf16 %v946_v23, %v945_v22 }
 0x630   :  { %1511 = vmatmul.mubr.bf16.vlgmr.msra.gmra.mrb[12].mxu0 %v947_v24 }
 0x703   :  { %v1053_v28 = vpop.f32.mrb[12].mxu0 }
 0x704   :  { %v1054_v29 = vadd.f32 %v1304_v27, %v1053_v28  ;;  %v1512_v30 = vpop.f32.mrb[13].mxu0 }
 0x705   :  { %v1056_v31 = vpop.f32.mrb[14].mxu0 }
 0x706   :  { %v1057_v32 = vadd.f32 %v1304_v27, %v1056_v31  ;;  %v1513_v33 = vpop.f32.mrb[15].mxu0  ;;  %v1060_v34 = vmax.f32 %v1054_v29, 0.0 }
 0x708   :  { %v1061_v35 = vmax.f32 %v1057_v32, 0.0 }
 0x70a   :  { %v1062_v36 = vpack.c.bf16 %v1061_v35, %v1060_v34 }
 0x70c   :  { %1531 = vmatmul.mubr.bf16.vlgmr.msra.gmra.mrb[12].mxu1 %v1062_v36 }
 0x70d   :  { %1870 = shalt.err (!%p1867_p0)
}
 0x70e   :  { %s1871_s24 = scalar_lea.hbm %s2374_s19, 256 }
 0x70f   :  { %p1872_p1 = scmp.ne.s32.totalorder %s2374_s19, %s1871_s24  ;;  %p1875_p2 = scmp.lt.u32.totalorder %s1871_s24, %s2374_s19 }
 0x711   :  { %p1877_p3 = pnand %p1875_p2, %p1872_p1 }
 0x713   :  { %1880 = shalt.err (!%p1877_p3)
}
 0x714   :  { %1212 = dma.vmem_to_hbm [thread:$0]  %s1207_s1, 256, %s2374_s19, [#allocation21], %s1942_s29, %s1942_s29, %s1943_s30  }
 0x715   :  { %s1959_s26 = smov [#allocation22]  }
 0x716   :  { %s1218_s17 = sshll.u32 %s1959_s26, 4  ;;  %s1219_s17 = int_to_ptr.vmem [resolvable:$true] %s1218_s17 }
 0x717   :  { %s1881_s12 = scalar_lea.vmem %s1219_s17, 256  ;;  %p1886_p5 = scmp.lt.s32.totalorder %s1219_s17, %s1219_s17 }
 0x718   :  { %p1882_p4 = scmp.ne.s32.totalorder %s1219_s17, %s1881_s12  ;;  %p1887_p6 = scmp.lt.s32.totalorder %s1881_s12, %s1881_s12 }
 0x71a   :  { %p1888_p7 = por %p1887_p6, %p1886_p5 }
 0x71c   :  { %p1889_p8 = pnand %p1888_p7, %p1882_p4 }
 0x71e   :  { %1892 = shalt.err (!%p1889_p8)
}
 0x71f   :  { %s2395_s4 = sld [smem:[#allocation38_spill]] }
 0x725   :  { %s1893_s7 = scalar_lea.hbm %s2395_s4, 256 }
 0x726   :  { %p1894_p9 = scmp.ne.s32.totalorder %s2395_s4, %s1893_s7  ;;  %p1897_p10 = scmp.lt.u32.totalorder %s1893_s7, %s2395_s4 }
 0x728   :  { %p1899_p11 = pnand %p1897_p10, %p1894_p9 }
 0x72a   :  { %1902 = shalt.err (!%p1899_p11)
}
 0x72b   :  { %1224 = dma.vmem_to_hbm [thread:$0]  %s1219_s17, 256, %s2395_s4, [#allocation21], %s1942_s29, %s1942_s29, %s1943_s30  }
 0x72c   :  { %s2396_s13 = sld [smem:[#allocation36_spill]]  ;;  %s1960_s1 = smov [#allocation19]  }
 0x72d   :  { %s1194_s6 = sshll.u32 %s1960_s1, 4  ;;  %s1195_s6 = int_to_ptr.vmem [resolvable:$true] %s1194_s6 }
 0x72e   :  { %s1903_s15 = scalar_lea.vmem %s1195_s6, 128  ;;  %p1908_p13 = scmp.lt.s32.totalorder %s1195_s6, %s1195_s6 }
 0x72f   :  { %p1904_p12 = scmp.ne.s32.totalorder %s1195_s6, %s1903_s15  ;;  %p1909_p0 = scmp.lt.s32.totalorder %s1903_s15, %s1903_s15 }
 0x731   :  { %p1910_p1 = por %p1909_p0, %p1908_p13 }
 0x732   :  { %v1313_v0 = vld [vmem:[%s2396_s13] ss:$0 sm:$0xff] }
 0x733   :  { %p1911_p2 = pnand %p1910_p1, %p1904_p12 }
 0x7df   :  { %v1168_v37 = vpop.f32.mrb[12].mxu1 }
 0x7e0   :  { %v1532_v38 = vpop.f32.mrb[13].mxu1  ;;  %v1169_v40 = vadd.f32 %v1313_v0, %v1168_v37 }
 0x7e1   :  { %v1171_v39 = vpop.f32.mrb[14].mxu1 }
 0x7e2   :  { %v1172_v41 = vadd.f32 %v1313_v0, %v1171_v39  ;;  %v1533_v42 = vpop.f32.mrb[15].mxu1 }
 0x7e4   :  { %v1329_v43 = vpack.c.bf16 %v1172_v41, %v1169_v40 }
 0x7e6   :  { %1330 = vst [vmem:[#allocation19] sm:$0xff] %v1329_v43  }
 0x7e7   :  { %1914 = shalt.err (!%p1911_p2)
}
 0x7e8   :  { %s2397_s23 = sld [smem:[#allocation37_spill]] }
 0x7ee   :  { %s1915_s24 = scalar_lea.hbm %s2397_s23, 128 }
 0x7ef   :  { %p1916_p3 = scmp.ne.s32.totalorder %s2397_s23, %s1915_s24  ;;  %p1919_p4 = scmp.lt.u32.totalorder %s1915_s24, %s2397_s23 }
 0x7f1   :  { %p1921_p5 = pnand %p1919_p4, %p1916_p3 }
 0x7f3   :  { %1924 = shalt.err (!%p1921_p5)
}
 0x7f4   :  { %1200 = dma.vmem_to_hbm [thread:$0]  %s1195_s6, 128, %s2397_s23, [#allocation4], %s1946_s2, %s1946_s2, %s1947_s0  }
 0x7f5   :  { %1937 = dma.done.wait [#allocation4], 128  }
 0x7f6   :  { %1938 = vsyncadd [#allocation4], 4294967168 }
 0x7f7   :  { %1939 = dma.done.wait [#allocation21], 512  }
 0x7f8   :  { %1940 = vsyncadd [#allocation21], 4294966784 }
 0x7f9   :  { %1234 = vsyncpa [#allocation3], 1 }
 0x7fa   :  { %1235 = vsyncpa [#allocation6], 1 }
 0x7fb   :  { %1236 = vsyncpa [#allocation9], 1 }
 0x7fc   :  { %1237 = vsyncpa [#allocation12], 1 }
 0x7fd   :  { %1238 = vsyncpa [#allocation15], 1 }
 0x7fe   :  { %1239 = vsyncpa [#allocation18], 1 }
 0x7ff   :  { %1240 = vsyncpa [#allocation4], 1 }
 0x800   :  { %1241 = vsyncpa [#allocation21], 1 }

// kernel: tpu_custom_call.1
= control target key start
LH: loop header
LB: loop body
LE: loop exit
PB: predicated region body
PF: predicated region fallthrough
CT: control target
= control target key end

     0   :  { %s2355_s0 = inlined_call_operand.hbm [shape: bf16[16,128], index: 0, kind: input, shape index: {}]   ;;  %s2356_s1 = inlined_call_operand.hbm [shape: f32[16,128], index: 1, kind: input, shape index: {}]   ;;  %s2357_s2 = inlined_call_operand.hbm [shape: bf16[128,128], index: 2, kind: input, shape index: {}]   ;;  %s2358_s3 = inlined_call_operand.vmem [shape: f32[1,128], index: 3, kind: input, shape index: {}]   ;;  %s2359_s4 = inlined_call_operand.hbm [shape: bf16[128,128], index: 4, kind: input, shape index: {}]   ;;  %s2360_s5 = inlined_call_operand.vmem [shape: f32[1,128], index: 5, kind: input, shape index: {}]   ;;  %s2361_s6 = inlined_call_operand.hbm [shape: bf16[128,128], index: 6, kind: input, shape index: {}]   ;;  %s2362_s7 = inlined_call_operand.vmem [shape: f32[1,128], index: 7, kind: input, shape index: {}]   ;;  %s2363_s8 = inlined_call_operand.hbm [shape: bf16[128,256], index: 8, kind: input, shape index: {}]   ;;  %s2364_s9 = inlined_call_operand.vmem [shape: f32[1,256], index: 9, kind: input, shape index: {}]   ;;  %s2365_s10 = inlined_call_operand.hbm [shape: bf16[128,128], index: 10, kind: input, shape index: {}]   ;;  %s2366_s11 = inlined_call_operand.vmem [shape: f32[1,128], index: 11, kind: input, shape index: {}]   ;;  %s2367_s12 = inlined_call_operand.hbm [shape: bf16[128,128], index: 12, kind: input, shape index: {}]   ;;  %s2368_s13 = inlined_call_operand.vmem [shape: f32[1,128], index: 13, kind: input, shape index: {}]   ;;  %s2369_s14 = inlined_call_operand.hbm [shape: bf16[128,128], index: 14, kind: input, shape index: {}]   ;;  %s2370_s15 = inlined_call_operand.vmem [shape: f32[1,128], index: 15, kind: input, shape index: {}]   ;;  %s2371_s16 = inlined_call_operand.hbm [shape: bf16[128,128], index: 16, kind: input, shape index: {}]   ;;  %s2372_s17 = inlined_call_operand.vmem [shape: f32[1,128], index: 17, kind: input, shape index: {}]   ;;  %s2373_s18 = inlined_call_operand.hbm [shape: bf16[16,128], index: 18, kind: output, shape index: {0}]   ;;  %s2374_s19 = inlined_call_operand.hbm [shape: f32[16,128], index: 19, kind: output, shape index: {1}]   ;;  %s2375_s20 = inlined_call_operand.hbm [shape: f32[16,128], index: 20, kind: output, shape index: {2}]  }
   0x1   :  { %2382 = sst [smem:[#allocation31_spill]] %s2355_s0 }
   0x2   :  { %2383 = sst [smem:[#allocation32_spill]] %s2356_s1 }
   0x3   :  { %2384 = sst [smem:[#allocation33_spill]] %s2357_s2 }
   0x4   :  { %2385 = sst [smem:[#allocation34_spill]] %s2358_s3 }
   0x5   :  { %2386 = sst [smem:[#allocation35_spill]] %s2359_s4 }
   0x6   :  { %2387 = sst [smem:[#allocation36_spill]] %s2372_s17 }
   0x7   :  { %2388 = sst [smem:[#allocation37_spill]] %s2373_s18 }
   0x8   :  { %2389 = sst [smem:[#allocation38_spill]] %s2375_s20 }
   0x9   :  { %26 = vsyncpa [#allocation3], 0 }
   0xa   :  { %27 = vsyncpa [#allocation6], 0 }
   0xb   :  { %28 = vsyncpa [#allocation9], 0 }
   0xc   :  { %29 = vsyncpa [#allocation12], 0 }
   0xd   :  { %30 = vsyncpa [#allocation15], 0 }
   0xe   :  { %31 = vsyncpa [#allocation18], 0 }
   0xf   :  { %32 = vsyncpa [#allocation4], 0 }
  0x10   :  { %33 = vsyncpa [#allocation21], 0  ;;  %s1941_s1 = smov [#allocation5]   ;;  %s2390_s2 = sld [smem:[#allocation32_spill]] }
  0x11   :  { %s51_s22 = sshll.u32 %s1941_s1, 4  ;;  %s52_s22 = int_to_ptr.vmem [resolvable:$true] %s51_s22 }
  0x16   :  { %s1639_s25 = scalar_lea.hbm %s2390_s2, 256 }
  0x17   :  { %p1640_p0 = scmp.ne.s32.totalorder %s2390_s2, %s1639_s25  ;;  %p1643_p1 = scmp.lt.u32.totalorder %s1639_s25, %s2390_s2 }
  0x19   :  { %p1645_p2 = pnand %p1643_p1, %p1640_p0 }
  0x1b   :  { %1648 = shalt.err (!%p1645_p2)
}
  0x1c   :  { %s1649_s4 = scalar_lea.vmem %s52_s22, 256  ;;  %p1654_p4 = scmp.lt.s32.totalorder %s52_s22, %s52_s22 }
  0x1d   :  { %p1650_p3 = scmp.ne.s32.totalorder %s52_s22, %s1649_s4  ;;  %p1655_p5 = scmp.lt.s32.totalorder %s1649_s4, %s1649_s4 }
  0x1f   :  { %p1656_p6 = por %p1655_p5, %p1654_p4 }
  0x21   :  { %p1657_p7 = pnand %p1656_p6, %p1650_p3 }
  0x23   :  { %1660 = shalt.err (!%p1657_p7)
}
  0x24   :  { %s1942_s29 = smov 128   ;;  %s1943_s30 = smov 8  }
  0x25   :  { %57 = dma.hbm_to_vmem [thread:$0]  %s2390_s2, 256, %s52_s22, [#allocation6], %s1942_s29, %s1942_s29, %s1943_s30  }
  0x26   :  { %s1944_s1 = smov [#allocation8]   ;;  %s1945_s24 = smov [#allocation11]  }
  0x27   :  { %s77_s23 = sshll.u32 %s1944_s1, 4  ;;  %s105_s25 = sshll.u32 %s1945_s24, 4  ;;  %s78_s23 = int_to_ptr.vmem [resolvable:$true] %s77_s23  ;;  %s106_s25 = int_to_ptr.vmem [resolvable:$true] %s105_s25 }
  0x28   :  { %s2391_s27 = sld [smem:[#allocation35_spill]] }
  0x2e   :  { %s1661_s28 = scalar_lea.hbm %s2391_s27, 1024 }
  0x2f   :  { %p1662_p8 = scmp.ne.s32.totalorder %s2391_s27, %s1661_s28  ;;  %p1665_p9 = scmp.lt.u32.totalorder %s1661_s28, %s2391_s27 }
  0x31   :  { %p1667_p10 = pnand %p1665_p9, %p1662_p8 }
  0x33   :  { %1670 = shalt.err (!%p1667_p10)
}
  0x34   :  { %s1671_s22 = scalar_lea.vmem %s78_s23, 1024  ;;  %p1676_p12 = scmp.lt.s32.totalorder %s78_s23, %s78_s23 }
  0x35   :  { %p1672_p11 = scmp.ne.s32.totalorder %s78_s23, %s1671_s22  ;;  %p1677_p13 = scmp.lt.s32.totalorder %s1671_s22, %s1671_s22 }
  0x37   :  { %p1678_p0 = por %p1677_p13, %p1676_p12 }
  0x39   :  { %p1679_p1 = pnand %p1678_p0, %p1672_p11 }
  0x3b   :  { %1682 = shalt.err (!%p1679_p1)
}
  0x3c   :  { %s1946_s2 = smov 64   ;;  %s1947_s0 = smov 4  }
  0x3d   :  { %83 = dma.hbm_to_vmem [thread:$0]  %s2391_s27, 1024, %s78_s23, [#allocation9], %s1946_s2, %s1946_s2, %s1947_s0  }
  0x3e   :  { %s1683_s1 = scalar_lea.hbm %s2363_s8, 2048 }
  0x3f   :  { %p1684_p2 = scmp.ne.s32.totalorder %s2363_s8, %s1683_s1  ;;  %p1687_p3 = scmp.lt.u32.totalorder %s1683_s1, %s2363_s8 }
  0x41   :  { %p1689_p4 = pnand %p1687_p3, %p1684_p2 }
  0x43   :  { %1692 = shalt.err (!%p1689_p4)
}
  0x44   :  { %s1693_s4 = scalar_lea.vmem %s106_s25, 2048  ;;  %p1698_p6 = scmp.lt.s32.totalorder %s106_s25, %s106_s25 }
  0x45   :  { %p1694_p5 = scmp.ne.s32.totalorder %s106_s25, %s1693_s4  ;;  %p1699_p7 = scmp.lt.s32.totalorder %s1693_s4, %s1693_s4 }
  0x47   :  { %p1700_p8 = por %p1699_p7, %p1698_p6 }
  0x49   :  { %p1701_p9 = pnand %p1700_p8, %p1694_p5 }
  0x4b   :  { %1704 = shalt.err (!%p1701_p9)
}
  0x4c   :  { %111 = dma.hbm_to_vmem [thread:$0]  %s2363_s8, 2048, %s106_s25, [#allocation12], %s1942_s29, %s1942_s29, %s1943_s30  }
  0x4d   :  { %s1948_s22 = smov [#allocation14]   ;;  %s1949_s21 = smov [#allocation2]  }
  0x4e   :  { %s133_s18 = sshll.u32 %s1948_s22, 4  ;;  %s39_s17 = sshll.u32 %s1949_s21, 4  ;;  %s134_s18 = int_to_ptr.vmem [resolvable:$true] %s133_s18  ;;  %s40_s17 = int_to_ptr.vmem [resolvable:$true] %s39_s17 }
  0x4f   :  { %s1705_s24 = scalar_lea.hbm %s2367_s12, 1024 }
  0x50   :  { %p1706_p10 = scmp.ne.s32.totalorder %s2367_s12, %s1705_s24  ;;  %p1709_p11 = scmp.lt.u32.totalorder %s1705_s24, %s2367_s12 }
  0x52   :  { %p1711_p12 = pnand %p1709_p11, %p1706_p10 }
  0x54   :  { %1714 = shalt.err (!%p1711_p12)
}
  0x55   :  { %s1715_s8 = scalar_lea.vmem %s134_s18, 1024  ;;  %p1720_p0 = scmp.lt.s32.totalorder %s134_s18, %s134_s18 }
  0x56   :  { %p1716_p13 = scmp.ne.s32.totalorder %s134_s18, %s1715_s8  ;;  %p1721_p1 = scmp.lt.s32.totalorder %s1715_s8, %s1715_s8 }
  0x58   :  { %p1722_p2 = por %p1721_p1, %p1720_p0 }
  0x5a   :  { %p1723_p3 = pnand %p1722_p2, %p1716_p13 }
  0x5c   :  { %1726 = shalt.err (!%p1723_p3)
}
  0x5d   :  { %139 = dma.hbm_to_vmem [thread:$0]  %s2367_s12, 1024, %s134_s18, [#allocation15], %s1946_s2, %s1946_s2, %s1947_s0  }
  0x5e   :  { %s2392_s21 = sld [smem:[#allocation31_spill]] }
  0x64   :  { %s1727_s20 = scalar_lea.hbm %s2392_s21, 128 }
  0x65   :  { %p1728_p4 = scmp.ne.s32.totalorder %s2392_s21, %s1727_s20  ;;  %p1731_p5 = scmp.lt.u32.totalorder %s1727_s20, %s2392_s21 }
  0x67   :  { %p1733_p6 = pnand %p1731_p5, %p1728_p4 }
  0x69   :  { %1736 = shalt.err (!%p1733_p6)
}
  0x6a   :  { %s1737_s28 = scalar_lea.vmem %s40_s17, 128  ;;  %p1742_p8 = scmp.lt.s32.totalorder %s40_s17, %s40_s17 }
  0x6b   :  { %p1738_p7 = scmp.ne.s32.totalorder %s40_s17, %s1737_s28  ;;  %p1743_p9 = scmp.lt.s32.totalorder %s1737_s28, %s1737_s28 }
  0x6d   :  { %p1744_p10 = por %p1743_p9, %p1742_p8 }
  0x6f   :  { %p1745_p11 = pnand %p1744_p10, %p1738_p7 }
  0x71   :  { %1748 = shalt.err (!%p1745_p11)
}
  0x72   :  { %45 = dma.hbm_to_vmem [thread:$0]  %s2392_s21, 128, %s40_s17, [#allocation3], %s1946_s2, %s1946_s2, %s1947_s0  }
  0x73   :  { %s1950_s4 = smov [#allocation7]   ;;  %s1951_s25 = smov [#allocation10]  }
  0x74   :  { %s63_s8 = sshll.u32 %s1950_s4, 4  ;;  %s91_s23 = sshll.u32 %s1951_s25, 4  ;;  %s64_s8 = int_to_ptr.vmem [resolvable:$true] %s63_s8  ;;  %s92_s23 = int_to_ptr.vmem [resolvable:$true] %s91_s23 }
  0x75   :  { %s2393_s20 = sld [smem:[#allocation33_spill]] }
  0x7b   :  { %s1749_s1 = scalar_lea.hbm %s2393_s20, 1024 }
  0x7c   :  { %p1750_p12 = scmp.ne.s32.totalorder %s2393_s20, %s1749_s1  ;;  %p1753_p13 = scmp.lt.u32.totalorder %s1749_s1, %s2393_s20 }
  0x7e   :  { %p1755_p0 = pnand %p1753_p13, %p1750_p12 }
  0x80   :  { %1758 = shalt.err (!%p1755_p0)
}
  0x81   :  { %s1759_s17 = scalar_lea.vmem %s64_s8, 1024  ;;  %p1764_p2 = scmp.lt.s32.totalorder %s64_s8, %s64_s8 }
  0x82   :  { %p1760_p1 = scmp.ne.s32.totalorder %s64_s8, %s1759_s17  ;;  %p1765_p3 = scmp.lt.s32.totalorder %s1759_s17, %s1759_s17 }
  0x84   :  { %p1766_p4 = por %p1765_p3, %p1764_p2 }
  0x86   :  { %p1767_p5 = pnand %p1766_p4, %p1760_p1 }
  0x88   :  { %1770 = shalt.err (!%p1767_p5)
}
  0x89   :  { %69 = dma.hbm_to_vmem [thread:$0]  %s2393_s20, 1024, %s64_s8, [#allocation6], %s1946_s2, %s1946_s2, %s1947_s0  }
  0x8a   :  { %s1771_s25 = scalar_lea.hbm %s2361_s6, 1024 }
  0x8b   :  { %p1772_p6 = scmp.ne.s32.totalorder %s2361_s6, %s1771_s25  ;;  %p1775_p7 = scmp.lt.u32.totalorder %s1771_s25, %s2361_s6 }
  0x8d   :  { %p1777_p8 = pnand %p1775_p7, %p1772_p6 }
  0x8f   :  { %1780 = shalt.err (!%p1777_p8)
}
  0x90   :  { %s1781_s3 = scalar_lea.vmem %s92_s23, 1024  ;;  %p1786_p10 = scmp.lt.s32.totalorder %s92_s23, %s92_s23 }
  0x91   :  { %p1782_p9 = scmp.ne.s32.totalorder %s92_s23, %s1781_s3  ;;  %p1787_p11 = scmp.lt.s32.totalorder %s1781_s3, %s1781_s3 }
  0x93   :  { %p1788_p12 = por %p1787_p11, %p1786_p10 }
  0x95   :  { %p1789_p13 = pnand %p1788_p12, %p1782_p9 }
  0x97   :  { %1792 = shalt.err (!%p1789_p13)
}
  0x98   :  { %97 = dma.hbm_to_vmem [thread:$0]  %s2361_s6, 1024, %s92_s23, [#allocation9], %s1946_s2, %s1946_s2, %s1947_s0  }
  0x99   :  { %s1952_s26 = smov [#allocation13]   ;;  %s1953_s17 = smov [#allocation16]  }
  0x9a   :  { %s119_s28 = sshll.u32 %s1952_s26, 4  ;;  %s147_s21 = sshll.u32 %s1953_s17, 4  ;;  %s120_s28 = int_to_ptr.vmem [resolvable:$true] %s119_s28  ;;  %s148_s21 = int_to_ptr.vmem [resolvable:$true] %s147_s21 }
  0x9b   :  { %s1793_s4 = scalar_lea.hbm %s2365_s10, 1024 }
  0x9c   :  { %p1794_p0 = scmp.ne.s32.totalorder %s2365_s10, %s1793_s4  ;;  %p1797_p1 = scmp.lt.u32.totalorder %s1793_s4, %s2365_s10 }
  0x9e   :  { %p1799_p2 = pnand %p1797_p1, %p1794_p0 }
  0xa0   :  { %1802 = shalt.err (!%p1799_p2)
}
  0xa1   :  { %s1803_s6 = scalar_lea.vmem %s120_s28, 1024  ;;  %p1808_p4 = scmp.lt.s32.totalorder %s120_s28, %s120_s28 }
  0xa2   :  { %p1804_p3 = scmp.ne.s32.totalorder %s120_s28, %s1803_s6  ;;  %p1809_p5 = scmp.lt.s32.totalorder %s1803_s6, %s1803_s6 }
  0xa4   :  { %p1810_p6 = por %p1809_p5, %p1808_p4 }
  0xa6   :  { %p1811_p7 = pnand %p1810_p6, %p1804_p3 }
  0xa8   :  { %1814 = shalt.err (!%p1811_p7)
}
  0xa9   :  { %125 = dma.hbm_to_vmem [thread:$0]  %s2365_s10, 1024, %s120_s28, [#allocation12], %s1946_s2, %s1946_s2, %s1947_s0  }
  0xaa   :  { %s1815_s20 = scalar_lea.hbm %s2369_s14, 1024 }
  0xab   :  { %p1816_p8 = scmp.ne.s32.totalorder %s2369_s14, %s1815_s20  ;;  %p1819_p9 = scmp.lt.u32.totalorder %s1815_s20, %s2369_s14 }
  0xad   :  { %p1821_p10 = pnand %p1819_p9, %p1816_p8 }
  0xaf   :  { %1824 = shalt.err (!%p1821_p10)
}
  0xb0   :  { %s1825_s4 = scalar_lea.vmem %s148_s21, 1024  ;;  %p1830_p12 = scmp.lt.s32.totalorder %s148_s21, %s148_s21 }
  0xb1   :  { %p1826_p11 = scmp.ne.s32.totalorder %s148_s21, %s1825_s4  ;;  %p1831_p13 = scmp.lt.s32.totalorder %s1825_s4, %s1825_s4 }
  0xb3   :  { %p1832_p0 = por %p1831_p13, %p1830_p12 }
  0xb5   :  { %p1833_p1 = pnand %p1832_p0, %p1826_p11 }
  0xb7   :  { %1836 = shalt.err (!%p1833_p1)
}
  0xb8   :  { %153 = dma.hbm_to_vmem [thread:$0]  %s2369_s14, 1024, %s148_s21, [#allocation15], %s1946_s2, %s1946_s2, %s1947_s0  }
  0xb9   :  { %s1954_s25 = smov [#allocation17]   ;;  %s1837_s6 = scalar_lea.hbm %s2371_s16, 1024 }
  0xba   :  { %s161_s27 = sshll.u32 %s1954_s25, 4  ;;  %p1838_p2 = scmp.ne.s32.totalorder %s2371_s16, %s1837_s6  ;;  %s162_s27 = int_to_ptr.vmem [resolvable:$true] %s161_s27 }
  0xbb   :  { %p1841_p3 = scmp.lt.u32.totalorder %s1837_s6, %s2371_s16 }
  0xbd   :  { %p1843_p4 = pnand %p1841_p3, %p1838_p2 }
  0xbf   :  { %1846 = shalt.err (!%p1843_p4)
}
  0xc0   :  { %s1847_s20 = scalar_lea.vmem %s162_s27, 1024  ;;  %p1852_p6 = scmp.lt.s32.totalorder %s162_s27, %s162_s27 }
  0xc1   :  { %p1848_p5 = scmp.ne.s32.totalorder %s162_s27, %s1847_s20  ;;  %p1853_p7 = scmp.lt.s32.totalorder %s1847_s20, %s1847_s20 }
  0xc3   :  { %p1854_p8 = por %p1853_p7, %p1852_p6 }
  0xc5   :  { %p1855_p9 = pnand %p1854_p8, %p1848_p5 }
  0xc7   :  { %1858 = shalt.err (!%p1855_p9)
}
  0xc8   :  { %167 = dma.hbm_to_vmem [thread:$0]  %s2371_s16, 1024, %s162_s27, [#allocation18], %s1946_s2, %s1946_s2, %s1947_s0  }
  0xc9   :  { %1925 = dma.done.wait [#allocation3], 128  }
  0xca   :  { %1926 = vsyncadd [#allocation3], 4294967168 }
  0xcb   :  { %1927 = dma.done.wait [#allocation6], 1280  }
  0xcc   :  { %1928 = vsyncadd [#allocation6], 4294966016 }
  0xcd   :  { %1929 = dma.done.wait [#allocation9], 2048  }
  0xce   :  { %1930 = vsyncadd [#allocation9], 4294965248 }
  0xcf   :  { %1931 = dma.done.wait [#allocation12], 3072  }
  0xd0   :  { %1932 = vsyncadd [#allocation12], 4294964224 }
  0xd1   :  { %1933 = dma.done.wait [#allocation15], 2048  }
  0xd2   :  { %1934 = vsyncadd [#allocation15], 4294965248 }
  0xd3   :  { %1935 = dma.done.wait [#allocation18], 1024  }
  0xd4   :  { %1936 = vsyncadd [#allocation18], 4294966272  ;;  %v1955_v0 = vmov 0.0   ;;  %vm1956_vm0 = vmmov 0   ;;  %v1554_v1 = vld [vmem:[#allocation7] sm:$0xff]   ;;  %v1555_v2 = vld [vmem:[#allocation7 + $0x8] sm:$0xff]  }
  0xd5   :  { %1394 = vmatprep.subr.bf16.mxu0 %v1955_v0  ;;  %1410 = vmatprep.mubr.msk.bf16.mxu0 %vm1956_vm0, %v1955_v0  ;;  %v1556_v3 = vld [vmem:[#allocation7 + $0x10] sm:$0xff]   ;;  %v1563_v4 = vld [vmem:[#allocation8] sm:$0xff]   ;;  %v1557_v5 = vld [vmem:[#allocation7 + $0x18] sm:$0xff]   ;;  %s2394_s17 = sld [smem:[#allocation34_spill]]  ;;  %v1957_v62 = vmov 0  }
  0xd6   :  { %1414 = vmatprep.subr.bf16.mxu1 %v1955_v0  ;;  %1430 = vmatprep.mubr.msk.bf16.mxu1 %vm1956_vm0, %v1955_v0  ;;  %v1564_v6 = vld [vmem:[#allocation8 + $0x8] sm:$0xff]   ;;  %v1558_v7 = vld [vmem:[#allocation7 + $0x20] sm:$0xff]   ;;  %v1565_v8 = vld [vmem:[#allocation8 + $0x10] sm:$0xff]  }
  0xd7   :  { %1395 = vmatpush3.bf16.msra.mxu0 %v1554_v1  ;;  %1415 = vmatpush3.bf16.msra.mxu1 %v1563_v4  ;;  %v1559_v9 = vld [vmem:[#allocation7 + $0x28] sm:$0xff]   ;;  %v1566_v10 = vld [vmem:[#allocation8 + $0x18] sm:$0xff]   ;;  %v1560_v11 = vld [vmem:[#allocation7 + $0x30] sm:$0xff]  }
  0xd8   :  { %1396 = vmatprep.subr.bf16.mxu0 %v1955_v0  ;;  %1416 = vmatprep.subr.bf16.mxu1 %v1955_v0  ;;  %v1567_v12 = vld [vmem:[#allocation8 + $0x20] sm:$0xff]   ;;  %v1561_v13 = vld [vmem:[#allocation7 + $0x38] sm:$0xff]   ;;  %v1568_v14 = vld [vmem:[#allocation8 + $0x28] sm:$0xff]  }
  0xd9   :  { %v1562_v15 = vld [vmem:[#allocation2] sm:$0xff]   ;;  %v1569_v16 = vld [vmem:[#allocation8 + $0x30] sm:$0xff]   ;;  %v1570_v17 = vld [vmem:[#allocation8 + $0x38] sm:$0xff]  }
  0xda   :  { %v1571_v18 = vld [vmem:[#allocation10] sm:$0xff]   ;;  %v1572_v19 = vld [vmem:[#allocation10 + $0x8] sm:$0xff]   ;;  %v1573_v20 = vld [vmem:[#allocation10 + $0x10] sm:$0xff]  }
  0xdb   :  { %1397 = vmatpush3.bf16.msra.mxu0 %v1555_v2  ;;  %1417 = vmatpush3.bf16.msra.mxu1 %v1564_v6  ;;  %v1574_v21 = vld [vmem:[#allocation10 + $0x18] sm:$0xff]   ;;  %v1575_v22 = vld [vmem:[#allocation10 + $0x20] sm:$0xff]   ;;  %v1576_v23 = vld [vmem:[#allocation10 + $0x28] sm:$0xff]  }
  0xdc   :  { %1398 = vmatprep.subr.bf16.mxu0 %v1955_v0  ;;  %1418 = vmatprep.subr.bf16.mxu1 %v1955_v0  ;;  %v1242_v24 = vld [vmem:[%s2394_s17] ss:$0 sm:$0xff]  ;;  %v1577_v34 = vld [vmem:[#allocation10 + $0x30] sm:$0xff]   ;;  %v1578_v35 = vld [vmem:[#allocation10 + $0x38] sm:$0xff]  }
  0xdd   :  { %v1579_v36 = vld [vmem:[#allocation11] ss:$8 sps:$4 sm:$0xff]   ;;  %v1581_v37 = vld [vmem:[#allocation11 + $0x4] ss:$8 sps:$4 sm:$0xff]   ;;  %v1584_v38 = vld [vmem:[#allocation11 + $0x14] ss:$8 sps:$4 sm:$0xff]  }
  0xde   :  { %v1582_v39 = vld [vmem:[#allocation11 + $0x10] ss:$8 sps:$4 sm:$0xff]   ;;  %v1587_v40 = vld [vmem:[#allocation11 + $0x24] ss:$8 sps:$4 sm:$0xff]   ;;  %v1585_v41 = vld [vmem:[#allocation11 + $0x20] ss:$8 sps:$4 sm:$0xff]  }
  0xdf   :  { %1399 = vmatpush3.bf16.msra.mxu0 %v1556_v3  ;;  %1419 = vmatpush3.bf16.msra.mxu1 %v1565_v8  ;;  %v1590_v42 = vld [vmem:[#allocation11 + $0x34] ss:$8 sps:$4 sm:$0xff]   ;;  %v1588_v43 = vld [vmem:[#allocation11 + $0x30] ss:$8 sps:$4 sm:$0xff]   ;;  %v1593_v44 = vld [vmem:[#allocation11 + $0x44] ss:$8 sps:$4 sm:$0xff]  }
  0xe0   :  { %1400 = vmatprep.subr.bf16.mxu0 %v1955_v0  ;;  %1420 = vmatprep.subr.bf16.mxu1 %v1955_v0  ;;  %v1591_v45 = vld [vmem:[#allocation11 + $0x40] ss:$8 sps:$4 sm:$0xff]   ;;  %v1596_v46 = vld [vmem:[#allocation11 + $0x54] ss:$8 sps:$4 sm:$0xff]   ;;  %v1594_v47 = vld [vmem:[#allocation11 + $0x50] ss:$8 sps:$4 sm:$0xff]  }
  0xe1   :  { %v1252_v48 = vld [vmem:[%s2360_s5] ss:$0 sm:$0xff]  ;;  %v1599_v58 = vld [vmem:[#allocation11 + $0x64] ss:$8 sps:$4 sm:$0xff]   ;;  %v1602_v60 = vld [vmem:[#allocation11 + $0x74] ss:$8 sps:$4 sm:$0xff]  }
  0xe2   :  { %v1597_v59 = vld [vmem:[#allocation11 + $0x60] ss:$8 sps:$4 sm:$0xff]   ;;  %v1600_v61 = vld [vmem:[#allocation11 + $0x70] ss:$8 sps:$4 sm:$0xff]  }
  0xe3   :  { %1401 = vmatpush3.bf16.msra.mxu0 %v1557_v5  ;;  %1421 = vmatpush3.bf16.msra.mxu1 %v1566_v10  ;;  %v1603_v63 = vld [vmem:[#allocation13] sm:$0xff]   ;;  %v1261_v1 = vld [vmem:[%s2362_s7] ss:$0 sm:$0xff] }
  0xe4   :  { %1402 = vmatprep.subr.bf16.mxu0 %v1955_v0  ;;  %1422 = vmatprep.subr.bf16.mxu1 %v1955_v0 }
  0xe7   :  { %1403 = vmatpush3.bf16.msra.mxu0 %v1558_v7  ;;  %1423 = vmatpush3.bf16.msra.mxu1 %v1567_v12  ;;  %v1605_v12 = vld [vmem:[#allocation13 + $0x10] sm:$0xff]  }
  0xe8   :  { %1404 = vmatprep.subr.bf16.mxu0 %v1955_v0  ;;  %1424 = vmatprep.subr.bf16.mxu1 %v1955_v0 }
  0xeb   :  { %1405 = vmatpush3.bf16.msra.mxu0 %v1559_v9  ;;  %1425 = vmatpush3.bf16.msra.mxu1 %v1568_v14  ;;  %v1607_v14 = vld [vmem:[#allocation13 + $0x20] sm:$0xff]  }
  0xec   :  { %1406 = vmatprep.subr.bf16.mxu0 %v1955_v0  ;;  %1426 = vmatprep.subr.bf16.mxu1 %v1955_v0 }
  0xef   :  { %1407 = vmatpush3.bf16.msra.mxu0 %v1560_v11  ;;  %1427 = vmatpush3.bf16.msra.mxu1 %v1569_v16  ;;  %v1604_v11 = vld [vmem:[#allocation13 + $0x8] sm:$0xff]   ;;  %v1609_v16 = vld [vmem:[#allocation13 + $0x30] sm:$0xff]  }
  0xf0   :  { %1408 = vmatprep.subr.bf16.mxu0 %v1955_v0  ;;  %1428 = vmatprep.subr.bf16.mxu1 %v1955_v0 }
  0xf3   :  { %1409 = vmatpush3.bf16.msra.mxu0 %v1561_v13  ;;  %1429 = vmatpush3.bf16.msra.mxu1 %v1570_v17  ;;  %v1606_v13 = vld [vmem:[#allocation13 + $0x18] sm:$0xff]  }
  0xf4   :  { %1434 = vmatprep.subr.bf16.mxu0 %v1955_v0  ;;  %662 = vmatprep.subr.bf16.mxu1 %v1581_v37  ;;  %v1610_v17 = vld [vmem:[#allocation13 + $0x38] sm:$0xff]  }
  0xf6   :  { %1411 = vmatmul.mubr.bf16.vlgmr.msra.gmra.mrb[0].mxu0 %v1562_v15  ;;  %v1608_v15 = vld [vmem:[#allocation13 + $0x28] sm:$0xff]  }
  0xf7   :  { %1450 = vmatprep.mubr.msk.bf16.mxu0 %vm1956_vm0, %v1955_v0  ;;  %1435 = vmatpush3.bf16.msra.mxu0 %v1571_v18  ;;  %v1611_v18 = vld [vmem:[#allocation14] sm:$0xff]  }
  0xf8   :  { %1436 = vmatprep.subr.bf16.mxu0 %v1955_v0 }
  0xfb   :  { %1437 = vmatpush3.bf16.msra.mxu0 %v1572_v19  ;;  %v1612_v19 = vld [vmem:[#allocation14 + $0x8] sm:$0xff]  }
  0xfc   :  { %1438 = vmatprep.subr.bf16.mxu0 %v1955_v0 }
  0xff   :  { %1439 = vmatpush3.bf16.msra.mxu0 %v1573_v20  ;;  %v1613_v20 = vld [vmem:[#allocation14 + $0x10] sm:$0xff]  }
 0x100   :  { %1440 = vmatprep.subr.bf16.mxu0 %v1955_v0 }
 0x103   :  { %1441 = vmatpush3.bf16.msra.mxu0 %v1574_v21  ;;  %v1614_v21 = vld [vmem:[#allocation14 + $0x18] sm:$0xff]  }
 0x104   :  { %1442 = vmatprep.subr.bf16.mxu0 %v1955_v0 }
 0x107   :  { %1443 = vmatpush3.bf16.msra.mxu0 %v1575_v22  ;;  %v1615_v22 = vld [vmem:[#allocation14 + $0x20] sm:$0xff]  }
 0x108   :  { %1444 = vmatprep.subr.bf16.mxu0 %v1955_v0 }
 0x10b   :  { %1445 = vmatpush3.bf16.msra.mxu0 %v1576_v23  ;;  %v1616_v23 = vld [vmem:[#allocation14 + $0x28] sm:$0xff]  }
 0x10c   :  { %1446 = vmatprep.subr.bf16.mxu0 %v1955_v0 }
 0x10f   :  { %1447 = vmatpush3.bf16.msra.mxu0 %v1577_v34 }
 0x110   :  { %1448 = vmatprep.subr.bf16.mxu0 %v1955_v0 }
 0x113   :  { %1449 = vmatpush3.bf16.msra.mxu0 %v1578_v35 }
 0x114   :  { %1454 = vmatprep.subr.bf16.mxu0 %v1955_v0 }
 0x1c9   :  { %v314_v25 = vpop.f32.mrb[0].mxu0 }
 0x1ca   :  { %v315_v26 = vadd.f32 %v1242_v24, %v314_v25  ;;  %v1412_v27 = vpop.f32.mrb[1].mxu0 }
 0x1cb   :  { %v317_v28 = vpop.f32.mrb[2].mxu0  ;;  %v570_v27 = vld [vmem:[%s2364_s9] sm:$0x3] }
 0x1cc   :  { %v318_v29 = vadd.f32 %v1242_v24, %v317_v28  ;;  %v1413_v30 = vpop.f32.mrb[3].mxu0  ;;  %v321_v31 = vmax.f32 %v315_v26, 0.0  ;;  %v572_v24 = vlaneseq }
 0x1ce   :  { %v322_v32 = vmax.f32 %v318_v29, 0.0  ;;  %v573_v25 = vshrl.u32 %v572_v24, 7 }
 0x1d0   :  { %v323_v33 = vpack.c.bf16 %v322_v32, %v321_v31  ;;  %v574_v26 = vsub.s32 0, %v573_v25  ;;  %v578_v28 = vsub.s32 1, %v573_v25  ;;  %v1633_v25 = vld [vmem:[#allocation17 + $0x30] sm:$0xff]  }
 0x1d2   :  { %1431 = vmatmul.mubr.bf16.vlgmr.msra.gmra.mrb[0].mxu1 %v323_v33  ;;  %v575_v29 = vrot.slane %v570_v27, %v574_v26  ;;  %v579_v30 = vrot.slane %v570_v27, %v578_v28  ;;  %v1634_v26 = vld [vmem:[#allocation17 + $0x38] sm:$0xff]   ;;  %v1304_v27 = vld [vmem:[%s2370_s15] ss:$0 sm:$0xff] }
 0x1d3   :  { %663 = vmatpush1.bf16.msra.mxu1 %v1579_v36  ;;  %694 = vmatprep.mubr.bf16.mxu1 %v1957_v62 }
 0x1d4   :  { %664 = vmatprep.subr.bf16.mxu1 %v1584_v38 }
 0x1d7   :  { %665 = vmatpush1.bf16.msra.mxu1 %v1582_v39 }
 0x1d8   :  { %666 = vmatprep.subr.bf16.mxu1 %v1587_v40 }
 0x1db   :  { %667 = vmatpush1.bf16.msra.mxu1 %v1585_v41 }
 0x1dc   :  { %668 = vmatprep.subr.bf16.mxu1 %v1590_v42 }
 0x1df   :  { %669 = vmatpush1.bf16.msra.mxu1 %v1588_v43  ;;  %v711_v43 = vld [vmem:[#allocation5] sm:$0xff] }
 0x1e0   :  { %670 = vmatprep.subr.bf16.mxu1 %v1593_v44 }
 0x1e3   :  { %671 = vmatpush1.bf16.msra.mxu1 %v1591_v45  ;;  %v712_v45 = vld [vmem:[#allocation5 + $0x8] sm:$0xff] }
 0x1e4   :  { %672 = vmatprep.subr.bf16.mxu1 %v1596_v46 }
 0x1e7   :  { %673 = vmatpush1.bf16.msra.mxu1 %v1594_v47 }
 0x1e8   :  { %674 = vmatprep.subr.bf16.mxu1 %v1599_v58  ;;  %v1623_v58 = vld [vmem:[#allocation16 + $0x20] sm:$0xff]  }
 0x1eb   :  { %675 = vmatpush1.bf16.msra.mxu1 %v1597_v59  ;;  %v1624_v59 = vld [vmem:[#allocation16 + $0x28] sm:$0xff]  }
 0x1ec   :  { %676 = vmatprep.subr.bf16.mxu1 %v1602_v60  ;;  %v1286_v60 = vld [vmem:[%s2366_s11] ss:$0 sm:$0xff] }
 0x1ef   :  { %677 = vmatpush1.bf16.msra.mxu1 %v1600_v61 }
 0x1f0   :  { %1474 = vmatprep.subr.bf16.mxu1 %v1955_v0 }
 0x2a5   :  { %v429_v49 = vpop.f32.mrb[0].mxu1 }
 0x2a6   :  { %v430_v50 = vadd.f32 %v1252_v48, %v429_v49  ;;  %v1432_v51 = vpop.f32.mrb[1].mxu1 }
 0x2a7   :  { %v432_v52 = vpop.f32.mrb[2].mxu1 }
 0x2a8   :  { %v433_v53 = vadd.f32 %v1252_v48, %v432_v52  ;;  %v1433_v54 = vpop.f32.mrb[3].mxu1  ;;  %v436_v55 = vmax.f32 %v430_v50, 0.0  ;;  %v1617_v52 = vld [vmem:[#allocation14 + $0x30] sm:$0xff]  }
 0x2a9   :  { %v1619_v54 = vld [vmem:[#allocation16] sm:$0xff]  }
 0x2aa   :  { %v437_v56 = vmax.f32 %v433_v53, 0.0  ;;  %v1618_v53 = vld [vmem:[#allocation14 + $0x38] sm:$0xff]  }
 0x2ac   :  { %v438_v57 = vpack.c.bf16 %v437_v56, %v436_v55  ;;  %v1620_v55 = vld [vmem:[#allocation16 + $0x8] sm:$0xff]   ;;  %v1621_v56 = vld [vmem:[#allocation16 + $0x10] sm:$0xff]  }
 0x2ae   :  { %1451 = vmatmul.mubr.bf16.vlgmr.msra.gmra.mrb[4].mxu0 %v438_v57  ;;  %v1622_v57 = vld [vmem:[#allocation16 + $0x18] sm:$0xff]  }
 0x2af   :  { %1470 = vmatprep.mubr.msk.bf16.mxu0 %vm1956_vm0, %v1955_v0  ;;  %1455 = vmatpush3.bf16.msra.mxu0 %v1603_v63 }
 0x2b0   :  { %1456 = vmatprep.subr.bf16.mxu0 %v1955_v0 }
 0x2b3   :  { %1457 = vmatpush3.bf16.msra.mxu0 %v1604_v11  ;;  %v1629_v11 = vld [vmem:[#allocation17 + $0x10] sm:$0xff]  }
 0x2b4   :  { %1458 = vmatprep.subr.bf16.mxu0 %v1955_v0 }
 0x2b7   :  { %1459 = vmatpush3.bf16.msra.mxu0 %v1605_v12  ;;  %v1630_v12 = vld [vmem:[#allocation17 + $0x18] sm:$0xff]  }
 0x2b8   :  { %1460 = vmatprep.subr.bf16.mxu0 %v1955_v0 }
 0x2bb   :  { %1461 = vmatpush3.bf16.msra.mxu0 %v1606_v13  ;;  %v1631_v13 = vld [vmem:[#allocation17 + $0x20] sm:$0xff]  }
 0x2bc   :  { %1462 = vmatprep.subr.bf16.mxu0 %v1955_v0 }
 0x2bf   :  { %1463 = vmatpush3.bf16.msra.mxu0 %v1607_v14  ;;  %v1632_v14 = vld [vmem:[#allocation17 + $0x28] sm:$0xff]  }
 0x2c0   :  { %1464 = vmatprep.subr.bf16.mxu0 %v1955_v0 }
 0x2c3   :  { %1465 = vmatpush3.bf16.msra.mxu0 %v1608_v15  ;;  %v1295_v15 = vld [vmem:[%s2368_s13] ss:$0 sm:$0xff]  ;;  %s1958_s13 = smov [#allocation20]  }
 0x2c4   :  { %1466 = vmatprep.subr.bf16.mxu0 %v1955_v0  ;;  %s1206_s1 = sshll.u32 %s1958_s13, 4  ;;  %s1207_s1 = int_to_ptr.vmem [resolvable:$true] %s1206_s1 }
 0x2c5   :  { %s1859_s6 = scalar_lea.vmem %s1207_s1, 256  ;;  %p1864_p11 = scmp.lt.s32.totalorder %s1207_s1, %s1207_s1 }
 0x2c6   :  { %p1860_p10 = scmp.ne.s32.totalorder %s1207_s1, %s1859_s6  ;;  %p1865_p12 = scmp.lt.s32.totalorder %s1859_s6, %s1859_s6 }
 0x2c7   :  { %1467 = vmatpush3.bf16.msra.mxu0 %v1609_v16 }
 0x2c8   :  { %1468 = vmatprep.subr.bf16.mxu0 %v1955_v0  ;;  %p1866_p13 = por %p1865_p12, %p1864_p11 }
 0x2ca   :  { %p1867_p0 = pnand %p1866_p13, %p1860_p10 }
 0x2cb   :  { %1469 = vmatpush3.bf16.msra.mxu0 %v1610_v17 }
 0x2cc   :  { %1494 = vmatprep.subr.bf16.mxu0 %v1955_v0 }
 0x381   :  { %v544_v2 = vpop.f32.mrb[4].mxu0 }
 0x382   :  { %v545_v3 = vadd.f32 %v1261_v1, %v544_v2  ;;  %v1452_v4 = vpop.f32.mrb[5].mxu0 }
 0x383   :  { %v547_v5 = vpop.f32.mrb[6].mxu0 }
 0x384   :  { %v548_v6 = vadd.f32 %v1261_v1, %v547_v5  ;;  %v1453_v7 = vpop.f32.mrb[7].mxu0  ;;  %v551_v8 = vmax.f32 %v545_v3, 0.0 }
 0x385   :  { %v1625_v7 = vld [vmem:[#allocation16 + $0x30] sm:$0xff]  }
 0x386   :  { %v552_v9 = vmax.f32 %v548_v6, 0.0 }
 0x388   :  { %v553_v10 = vpack.c.bf16 %v552_v9, %v551_v8  ;;  %v1626_v8 = vld [vmem:[#allocation16 + $0x38] sm:$0xff]   ;;  %v1627_v9 = vld [vmem:[#allocation17] sm:$0xff]  }
 0x38a   :  { %695 = vmatmul.mubr.bf16.vlgmr.msra.gmra.mrb[4].mxu1 %v553_v10  ;;  %v1628_v10 = vld [vmem:[#allocation17 + $0x8] sm:$0xff]  }
 0x38b   :  { %1490 = vmatprep.mubr.msk.bf16.mxu1 %vm1956_vm0, %v1955_v0  ;;  %1475 = vmatpush3.bf16.msra.mxu1 %v1611_v18 }
 0x38c   :  { %1476 = vmatprep.subr.bf16.mxu1 %v1955_v0 }
 0x38f   :  { %1477 = vmatpush3.bf16.msra.mxu1 %v1612_v19 }
 0x390   :  { %1478 = vmatprep.subr.bf16.mxu1 %v1955_v0 }
 0x393   :  { %1479 = vmatpush3.bf16.msra.mxu1 %v1613_v20 }
 0x394   :  { %1480 = vmatprep.subr.bf16.mxu1 %v1955_v0 }
 0x397   :  { %1481 = vmatpush3.bf16.msra.mxu1 %v1614_v21 }
 0x398   :  { %1482 = vmatprep.subr.bf16.mxu1 %v1955_v0 }
 0x39b   :  { %1483 = vmatpush3.bf16.msra.mxu1 %v1615_v22 }
 0x39c   :  { %1484 = vmatprep.subr.bf16.mxu1 %v1955_v0 }
 0x39f   :  { %1485 = vmatpush3.bf16.msra.mxu1 %v1616_v23 }
 0x3a0   :  { %1486 = vmatprep.subr.bf16.mxu1 %v1955_v0 }
 0x3a3   :  { %1487 = vmatpush3.bf16.msra.mxu1 %v1617_v52 }
 0x3a4   :  { %1488 = vmatprep.subr.bf16.mxu1 %v1955_v0 }
 0x3a7   :  { %1489 = vmatpush3.bf16.msra.mxu1 %v1618_v53 }
 0x3a8   :  { %1514 = vmatprep.subr.bf16.mxu1 %v1955_v0 }
 0x45d   :  { %v696_v31 = vpop.f32.mrb[4].mxu1 }
 0x45e   :  { %v697_v32 = vadd.f32 %v696_v31, %v575_v29  ;;  %v698_v33 = vpop.f32.mrb[5].mxu1 }
 0x45f   :  { %v699_v34 = vadd.f32 %v698_v33, %v579_v30  ;;  %v700_v35 = vpop.f32.mrb[6].mxu1 }
 0x460   :  { %1185 = vst [vmem:[#allocation20] sm:$0xff] %v697_v32  ;;  %v701_v36 = vadd.f32 %v700_v35, %v575_v29  ;;  %v702_v37 = vpop.f32.mrb[7].mxu1 }
 0x461   :  { %v705_v38 = vmul.f32 0.5, %v699_v34  ;;  %1187 = vst [vmem:[#allocation22] sm:$0xff] %v699_v34  ;;  %v703_v39 = vadd.f32 %v702_v37, %v579_v30 }
 0x462   :  { %1186 = vst [vmem:[#allocation20 + $0x8] sm:$0xff] %v701_v36 }
 0x463   :  { %v707_v40 = vmul.f32 1.442695, %v705_v38  ;;  %v706_v41 = vmul.f32 0.5, %v703_v39  ;;  %1188 = vst [vmem:[#allocation22 + $0x8] sm:$0xff] %v703_v39 }
 0x465   :  { %1635 = vpow2.f32 %v707_v40  ;;  %v709_v42 = vmul.f32 1.442695, %v706_v41 }
 0x467   :  { %1637 = vpow2.f32 %v709_v42 }
 0x46f   :  { %v1636_v44 = vpop.eup %1635 }
 0x470   :  { %v713_v46 = vmul.f32 %v1636_v44, %v711_v43 }
 0x471   :  { %v1638_v47 = vpop.eup %1637 }
 0x472   :  { %v714_v48 = vmul.f32 %v1638_v47, %v712_v45  ;;  %v715_v49 = vadd.f32 %v713_v46, %v697_v32 }
 0x474   :  { %v716_v50 = vadd.f32 %v714_v48, %v701_v36 }
 0x476   :  { %v717_v51 = vpack.c.bf16 %v716_v50, %v715_v49 }
 0x478   :  { %1471 = vmatmul.mubr.bf16.vlgmr.msra.gmra.mrb[8].mxu0 %v717_v51 }
 0x479   :  { %1510 = vmatprep.mubr.msk.bf16.mxu0 %vm1956_vm0, %v1955_v0  ;;  %1495 = vmatpush3.bf16.msra.mxu0 %v1619_v54 }
 0x47a   :  { %1496 = vmatprep.subr.bf16.mxu0 %v1955_v0 }
 0x47d   :  { %1497 = vmatpush3.bf16.msra.mxu0 %v1620_v55 }
 0x47e   :  { %1498 = vmatprep.subr.bf16.mxu0 %v1955_v0 }
 0x481   :  { %1499 = vmatpush3.bf16.msra.mxu0 %v1621_v56 }
 0x482   :  { %1500 = vmatprep.subr.bf16.mxu0 %v1955_v0 }
 0x485   :  { %1501 = vmatpush3.bf16.msra.mxu0 %v1622_v57 }
 0x486   :  { %1502 = vmatprep.subr.bf16.mxu0 %v1955_v0 }
 0x489   :  { %1503 = vmatpush3.bf16.msra.mxu0 %v1623_v58 }
 0x48a   :  { %1504 = vmatprep.subr.bf16.mxu0 %v1955_v0 }
 0x48d   :  { %1505 = vmatpush3.bf16.msra.mxu0 %v1624_v59 }
 0x48e   :  { %1506 = vmatprep.subr.bf16.mxu0 %v1955_v0 }
 0x491   :  { %1507 = vmatpush3.bf16.msra.mxu0 %v1625_v7 }
 0x492   :  { %1508 = vmatprep.subr.bf16.mxu0 %v1955_v0 }
 0x495   :  { %1509 = vmatpush3.bf16.msra.mxu0 %v1626_v8 }
 0x54b   :  { %v823_v61 = vpop.f32.mrb[8].mxu0 }
 0x54c   :  { %v824_v62 = vadd.f32 %v1286_v60, %v823_v61  ;;  %v1472_v63 = vpop.f32.mrb[9].mxu0 }
 0x54d   :  { %v826_v1 = vpop.f32.mrb[10].mxu0 }
 0x54e   :  { %v827_v2 = vadd.f32 %v1286_v60, %v826_v1  ;;  %v1473_v3 = vpop.f32.mrb[11].mxu0  ;;  %v830_v4 = vmax.f32 %v824_v62, 0.0 }
 0x550   :  { %v831_v5 = vmax.f32 %v827_v2, 0.0 }
 0x552   :  { %v832_v6 = vpack.c.bf16 %v831_v5, %v830_v4 }
 0x554   :  { %1491 = vmatmul.mubr.bf16.vlgmr.msra.gmra.mrb[8].mxu1 %v832_v6 }
 0x555   :  { %1530 = vmatprep.mubr.msk.bf16.mxu1 %vm1956_vm0, %v1955_v0  ;;  %1515 = vmatpush3.bf16.msra.mxu1 %v1627_v9 }
 0x556   :  { %1516 = vmatprep.subr.bf16.mxu1 %v1955_v0 }
 0x559   :  { %1517 = vmatpush3.bf16.msra.mxu1 %v1628_v10 }
 0x55a   :  { %1518 = vmatprep.subr.bf16.mxu1 %v1955_v0 }
 0x55d   :  { %1519 = vmatpush3.bf16.msra.mxu1 %v1629_v11 }
 0x55e   :  { %1520 = vmatprep.subr.bf16.mxu1 %v1955_v0 }
 0x561   :  { %1521 = vmatpush3.bf16.msra.mxu1 %v1630_v12 }
 0x562   :  { %1522 = vmatprep.subr.bf16.mxu1 %v1955_v0 }
 0x565   :  { %1523 = vmatpush3.bf16.msra.mxu1 %v1631_v13 }
 0x566   :  { %1524 = vmatprep.subr.bf16.mxu1 %v1955_v0 }
 0x569   :  { %1525 = vmatpush3.bf16.msra.mxu1 %v1632_v14 }
 0x56a   :  { %1526 = vmatprep.subr.bf16.mxu1 %v1955_v0 }
 0x56d   :  { %1527 = vmatpush3.bf16.msra.mxu1 %v1633_v25 }
 0x56e   :  { %1528 = vmatprep.subr.bf16.mxu1 %v1955_v0 }
 0x571   :  { %1529 = vmatpush3.bf16.msra.mxu1 %v1634_v26 }
 0x627   :  { %v938_v16 = vpop.f32.mrb[8].mxu1 }
 0x628   :  { %v939_v17 = vadd.f32 %v1295_v15, %v938_v16  ;;  %v1492_v18 = vpop.f32.mrb[9].mxu1 }
 0x629   :  { %v941_v19 = vpop.f32.mrb[10].mxu1 }
 0x62a   :  { %v942_v20 = vadd.f32 %v1295_v15, %v941_v19  ;;  %v1493_v21 = vpop.f32.mrb[11].mxu1  ;;  %v945_v22 = vmax.f32 %v939_v17, 0.0 }
 0x62c   :  { %v946_v23 = vmax.f32 %v942_v20, 0.0 }
 0x62e   :  { %v947_v24 = vpack.c.bf16 %v946_v23, %v945_v22 }
 0x630   :  { %1511 = vmatmul.mubr.bf16.vlgmr.msra.gmra.mrb[12].mxu0 %v947_v24 }
 0x703   :  { %v1053_v28 = vpop.f32.mrb[12].mxu0 }
 0x704   :  { %v1054_v29 = vadd.f32 %v1304_v27, %v1053_v28  ;;  %v1512_v30 = vpop.f32.mrb[13].mxu0 }
 0x705   :  { %v1056_v31 = vpop.f32.mrb[14].mxu0 }
 0x706   :  { %v1057_v32 = vadd.f32 %v1304_v27, %v1056_v31  ;;  %v1513_v33 = vpop.f32.mrb[15].mxu0  ;;  %v1060_v34 = vmax.f32 %v1054_v29, 0.0 }
 0x708   :  { %v1061_v35 = vmax.f32 %v1057_v32, 0.0 }
 0x70a   :  { %v1062_v36 = vpack.c.bf16 %v1061_v35, %v1060_v34 }
 0x70c   :  { %1531 = vmatmul.mubr.bf16.vlgmr.msra.gmra.mrb[12].mxu1 %v1062_v36 }
 0x70d   :  { %1870 = shalt.err (!%p1867_p0)
}
 0x70e   :  { %s1871_s24 = scalar_lea.hbm %s2374_s19, 256 }
 0x70f   :  { %p1872_p1 = scmp.ne.s32.totalorder %s2374_s19, %s1871_s24  ;;  %p1875_p2 = scmp.lt.u32.totalorder %s1871_s24, %s2374_s19 }
 0x711   :  { %p1877_p3 = pnand %p1875_p2, %p1872_p1 }
 0x713   :  { %1880 = shalt.err (!%p1877_p3)
}
 0x714   :  { %1212 = dma.vmem_to_hbm [thread:$0]  %s1207_s1, 256, %s2374_s19, [#allocation21], %s1942_s29, %s1942_s29, %s1943_s30  }
 0x715   :  { %s1959_s26 = smov [#allocation22]  }
 0x716   :  { %s1218_s17 = sshll.u32 %s1959_s26, 4  ;;  %s1219_s17 = int_to_ptr.vmem [resolvable:$true] %s1218_s17 }
 0x717   :  { %s1881_s12 = scalar_lea.vmem %s1219_s17, 256  ;;  %p1886_p5 = scmp.lt.s32.totalorder %s1219_s17, %s1219_s17 }
 0x718   :  { %p1882_p4 = scmp.ne.s32.totalorder %s1219_s17, %s1881_s12  ;;  %p1887_p6 = scmp.lt.s32.totalorder %s1881_s12, %s1881_s12 }
 0x71a   :  { %p1888_p7 = por %p1887_p6, %p1886_p5 }
 0x71c   :  { %p1889_p8 = pnand %p1888_p7, %p1882_p4 }
 0x71e   :  { %1892 = shalt.err (!%p1889_p8)
}
 0x71f   :  { %s2395_s4 = sld [smem:[#allocation38_spill]] }
 0x725   :  { %s1893_s7 = scalar_lea.hbm %s2395_s4, 256 }
 0x726   :  { %p1894_p9 = scmp.ne.s32.totalorder %s2395_s4, %s1893_s7  ;;  %p1897_p10 = scmp.lt.u32.totalorder %s1893_s7, %s2395_s4 }
 0x728   :  { %p1899_p11 = pnand %p1897_p10, %p1894_p9 }
 0x72a   :  { %1902 = shalt.err (!%p1899_p11)
}
 0x72b   :  { %1224 = dma.vmem_to_hbm [thread:$0]  %s1219_s17, 256, %s2395_s4, [#allocation21], %s1942_s29, %s1942_s29, %s1943_s30  }
 0x72c   :  { %s2396_s13 = sld [smem:[#allocation36_spill]]  ;;  %s1960_s1 = smov [#allocation19]  }
 0x72d   :  { %s1194_s6 = sshll.u32 %s1960_s1, 4  ;;  %s1195_s6 = int_to_ptr.vmem [resolvable:$true] %s1194_s6 }
 0x72e   :  { %s1903_s15 = scalar_lea.vmem %s1195_s6, 128  ;;  %p1908_p13 = scmp.lt.s32.totalorder %s1195_s6, %s1195_s6 }
 0x72f   :  { %p1904_p12 = scmp.ne.s32.totalorder %s1195_s6, %s1903_s15  ;;  %p1909_p0 = scmp.lt.s32.totalorder %s1903_s15, %s1903_s15 }
 0x731   :  { %p1910_p1 = por %p1909_p0, %p1908_p13 }
 0x732   :  { %v1313_v0 = vld [vmem:[%s2396_s13] ss:$0 sm:$0xff] }
 0x733   :  { %p1911_p2 = pnand %p1910_p1, %p1904_p12 }
 0x7df   :  { %v1168_v37 = vpop.f32.mrb[12].mxu1 }
 0x7e0   :  { %v1532_v38 = vpop.f32.mrb[13].mxu1  ;;  %v1169_v40 = vadd.f32 %v1313_v0, %v1168_v37 }
 0x7e1   :  { %v1171_v39 = vpop.f32.mrb[14].mxu1 }
 0x7e2   :  { %v1172_v41 = vadd.f32 %v1313_v0, %v1171_v39  ;;  %v1533_v42 = vpop.f32.mrb[15].mxu1 }
 0x7e4   :  { %v1329_v43 = vpack.c.bf16 %v1172_v41, %v1169_v40 }
 0x7e6   :  { %1330 = vst [vmem:[#allocation19] sm:$0xff] %v1329_v43  }
 0x7e7   :  { %1914 = shalt.err (!%p1911_p2)
}
 0x7e8   :  { %s2397_s23 = sld [smem:[#allocation37_spill]] }
 0x7ee   :  { %s1915_s24 = scalar_lea.hbm %s2397_s23, 128 }
 0x7ef   :  { %p1916_p3 = scmp.ne.s32.totalorder %s2397_s23, %s1915_s24  ;;  %p1919_p4 = scmp.lt.u32.totalorder %s1915_s24, %s2397_s23 }
 0x7f1   :  { %p1921_p5 = pnand %p1919_p4, %p1916_p3 }
 0x7f3   :  { %1924 = shalt.err (!%p1921_p5)
}
 0x7f4   :  { %1200 = dma.vmem_to_hbm [thread:$0]  %s1195_s6, 128, %s2397_s23, [#allocation4], %s1946_s2, %s1946_s2, %s1947_s0  }
 0x7f5   :  { %1937 = dma.done.wait [#allocation4], 128  }
 0x7f6   :  { %1938 = vsyncadd [#allocation4], 4294967168 }
 0x7f7   :  { %1939 = dma.done.wait [#allocation21], 512  }
 0x7f8   :  { %1940 = vsyncadd [#allocation21], 4294966784 }
 0x7f9   :  { %1234 = vsyncpa [#allocation3], 1 }
 0x7fa   :  { %1235 = vsyncpa [#allocation6], 1 }
 0x7fb   :  { %1236 = vsyncpa [#allocation9], 1 }
 0x7fc   :  { %1237 = vsyncpa [#allocation12], 1 }
 0x7fd   :  { %1238 = vsyncpa [#allocation15], 1 }
 0x7fe   :  { %1239 = vsyncpa [#allocation18], 1 }
 0x7ff   :  { %1240 = vsyncpa [#allocation4], 1 }
 0x800   :  { %1241 = vsyncpa [#allocation21], 1 }

</bundles_post_ra>
